<compile_context>
chip_gen: v5e
topology: v5e:2x2
jax: 0.10.0
libtpu: 0.0.40
codegen_flags: <defaults>
</compile_context>

<pallas_src>
import math

import jax
import jax.numpy as jnp
from jax import lax
from jax.experimental import pallas as pl
from jax.experimental.pallas import tpu as pltpu

_LN_EPS = 1e-12


def _layernorm(v, gamma, beta, eps=_LN_EPS):
    mean = jnp.mean(v, axis=-1, keepdims=True)
    var = jnp.mean(jnp.square(v - mean), axis=-1, keepdims=True)
    return (v - mean) * lax.rsqrt(var + eps) * gamma + beta


def _gelu_exact(x):
    # F.gelu default (erf-based, exact).
    return 0.5 * x * (1.0 + lax.erf(x * (1.0 / math.sqrt(2.0))))


def _ffn(y1, w1_ref, b1_ref, w2_ref, b2_ref, *, i_chunk):
    """gelu(y1 @ w1 + b1) @ w2 + b2, streamed over the intermediate dim in i_chunk columns."""
    tq, H = y1.shape
    I = w1_ref.shape[-1]
    y1b = y1.astype(jnp.bfloat16)

    if i_chunk >= I:
        h = jnp.dot(y1b, w1_ref[...], preferred_element_type=jnp.float32) + b1_ref[...]
        h = _gelu_exact(h)
        return jnp.dot(h.astype(jnp.bfloat16), w2_ref[...],
                       preferred_element_type=jnp.float32) + b2_ref[...]

    n_chunks = I // i_chunk

    def body(c, acc):
        c0 = pl.multiple_of(c * i_chunk, i_chunk)
        hc = (jnp.dot(y1b, w1_ref[:, pl.ds(c0, i_chunk)],
                      preferred_element_type=jnp.float32)
              + b1_ref[:, pl.ds(c0, i_chunk)])
        hc = _gelu_exact(hc)
        return acc + jnp.dot(hc.astype(jnp.bfloat16), w2_ref[pl.ds(c0, i_chunk), :],
                             preferred_element_type=jnp.float32)

    acc = lax.fori_loop(0, n_chunks, body, jnp.zeros((tq, H), jnp.float32), unroll=True)
    return acc + b2_ref[...]


def _encoder_layer_body(
    x_ref, mask_ref, k_ref, v_ref,
    wq_ref, bq_ref, wo_ref, bo_ref, g1_ref, be1_ref,
    w1_ref, b1_ref, w2_ref, b2_ref, g2_ref, be2_ref,
    out_ref, *, head_dim, i_chunk, approx_recip,
):
    x_q = x_ref[0].astype(jnp.float32)                                       # (TQ, H)

    # Q projection with 1/sqrt(head_dim) folded in (scale O(TQ*H), not the (TQ,S) scores).
    q = jnp.dot(x_q.astype(jnp.bfloat16), wq_ref[...],
                preferred_element_type=jnp.float32) + bq_ref[...]
    q = (q * (1.0 / math.sqrt(head_dim))).astype(jnp.bfloat16)

    # scores = q @ K^T without materializing a transpose (K/V precomputed outside the kernel).
    scores = lax.dot_general(q, k_ref[0], (((1,), (1,)), ((), ())),
                             preferred_element_type=jnp.float32)             # (TQ, S) f32
    if mask_ref is not None:
        scores = scores + mask_ref[0].astype(jnp.float32)

    scores = scores - jnp.max(scores, axis=-1, keepdims=True)
    e = jnp.exp(scores)
    denom = jnp.sum(e, axis=-1, keepdims=True)
    if approx_recip:
        probs = e * pl.reciprocal(denom, approx=True)
    else:
        probs = e / denom

    ctx = jnp.dot(probs.astype(jnp.bfloat16), v_ref[0],
                  preferred_element_type=jnp.float32)                        # (TQ, H) f32
    attn = jnp.dot(ctx.astype(jnp.bfloat16), wo_ref[...],
                   preferred_element_type=jnp.float32) + bo_ref[...]
    y1 = _layernorm(x_q + attn, g1_ref[...], be1_ref[...])

    f = _ffn(y1, w1_ref, b1_ref, w2_ref, b2_ref, i_chunk=i_chunk)
    out = _layernorm(y1 + f, g2_ref[...], be2_ref[...])

    out_ref[0] = out.astype(out_ref.dtype)


def _make_kernel(head_dim, i_chunk, approx_recip, has_mask):
    if has_mask:
        def kernel(x_ref, mask_ref, *rest):
            _encoder_layer_body(x_ref, mask_ref, *rest, head_dim=head_dim,
                                i_chunk=i_chunk, approx_recip=approx_recip)
    else:
        def kernel(x_ref, *rest):
            _encoder_layer_body(x_ref, None, *rest, head_dim=head_dim,
                                i_chunk=i_chunk, approx_recip=approx_recip)
    return kernel


def _vmem_cap_bytes():
    cap = 0
    try:
        info = pltpu.get_tpu_info()
        cap = int(getattr(info, "vmem_capacity_bytes", 0) or 0)
    except Exception:
        cap = 0
    if cap <= 0:
        cap = 128 << 20                       # conservative default when the query is unavailable
    return int(cap * 0.85)                    # headroom for Mosaic-internal scratch


def _choose_row_tile(S, vmem_cap):
    # 512 only on big-VMEM parts (v5e/v6e 128 MiB); 256 fills the MXU and is v7x-safe.
    cands = (512, 256, 128, 64, 32, 16, 8) if vmem_cap >= (96 << 20) else (256, 128, 64, 32, 16, 8)
    for cand in cands:
        if S % cand == 0:
            return cand
    return S


def _choose_i_chunk(I):
    for cand in (1024, 512):
        if I > cand and I % cand == 0:
            return cand
    return I


def _vmem_limit_bytes(S, H, I, tq, i_chunk, has_mask, single_buffer_weights, vmem_cap):
    f32, bf16 = 4, 2
    # Grid-invariant weight matrices (wq, wo, w1, w2): single-buffered with pl.Buffered(1).
    w_mats = (2 * H * H + 2 * H * I) * bf16 * (1 if single_buffer_weights else 2)
    # Small vectors (biases / LayerNorm params), double-buffered but tiny.
    small = 2 * (7 * H + I) * f32
    # Pipelined (double-buffered) data blocks.
    pipelined = 2 * (tq * H * f32                       # x q-tile
                     + 2 * S * H * bf16                 # K, V
                     + (tq * S * bf16 if has_mask else 0)
                     + tq * H * f32)                    # out tile
    # Live temps: scores/probs (tq,S); q/ctx/attn/y1/acc/out (tq,H); ffn chunk (tq,i_chunk).
    temps = (2 * tq * S + 6 * tq * H + tq * i_chunk) * f32
    est = int((w_mats + small + pipelined + temps) * 1.25) + (8 << 20)
    return max(32 << 20, min(est, vmem_cap))


def bert_encoder_layer(x, mask, params, num_heads, *,
                       single_buffer_weights=True, approx_recip=True):
    """x: (B, S, H); mask: None or (B, S, S) additive; params: dict of (in, out) weights."""
    B, S, H = x.shape
    I = params["w1"].shape[1]
    head_dim = H // num_heads
    vmem_cap = _vmem_cap_bytes()
    tq = _choose_row_tile(S, vmem_cap)
    i_chunk = _choose_i_chunk(I)
    n_q = S // tq
    has_mask = mask is not None

    bf16 = jnp.bfloat16
    wq = params["wq"].astype(bf16)
    wo = params["wo"].astype(bf16)
    w1 = params["w1"].astype(bf16)
    w2 = params["w2"].astype(bf16)

    # K / V precomputed outside the kernel (bf16-in / f32-accumulate, same numerics as in-kernel):
    # removes the per-batch first-tile MXU hump and lets both grid axes be "parallel".
    xb = x.astype(bf16)
    k = (jnp.einsum("bsh,hd->bsd", xb, params["wk"].astype(bf16),
                    preferred_element_type=jnp.float32) + params["bk"]).astype(bf16)
    v = (jnp.einsum("bsh,hd->bsd", xb, params["wv"].astype(bf16),
                    preferred_element_type=jnp.float32) + params["bv"]).astype(bf16)

    def wmat_spec(shape):
        if single_buffer_weights:
            # Grid-invariant weights: no double-buffering needed.
            return pl.BlockSpec(shape, lambda b, q: (0, 0), pipeline_mode=pl.Buffered(1))
        return pl.BlockSpec(shape, lambda b, q: (0, 0))

    def wvec_spec(shape):
        return pl.BlockSpec(shape, lambda b, q: (0, 0))

    in_specs = [pl.BlockSpec((1, tq, H), lambda b, q: (b, q, 0))]        # x: q-tile only
    operands = [x]
    if has_mask:
        in_specs.append(pl.BlockSpec((1, tq, S), lambda b, q: (b, q, 0)))
        operands.append(mask.astype(bf16))                               # bf16 mask halves DMA
    in_specs += [
        pl.BlockSpec((1, S, H), lambda b, q: (b, 0, 0)),                 # K (full sequence)
        pl.BlockSpec((1, S, H), lambda b, q: (b, 0, 0)),                 # V
        wmat_spec((H, H)), wvec_spec((1, H)),                            # wq, bq
        wmat_spec((H, H)), wvec_spec((1, H)),                            # wo, bo
        wvec_spec((1, H)), wvec_spec((1, H)),                            # ln1 gamma, beta
        wmat_spec((H, I)), wvec_spec((1, I)),                            # w1, b1
        wmat_spec((I, H)), wvec_spec((1, H)),                            # w2, b2
        wvec_spec((1, H)), wvec_spec((1, H)),                            # ln2 gamma, beta
    ]
    operands += [
        k, v, wq, params["bq"], wo, params["bo"], params["g1"], params["be1"],
        w1, params["b1"], w2, params["b2"], params["g2"], params["be2"],
    ]

    kernel = _make_kernel(head_dim, i_chunk, approx_recip, has_mask)

    return pl.pallas_call(
        kernel,
        out_shape=jax.ShapeDtypeStruct((B, S, H), x.dtype),
        grid_spec=pltpu.PrefetchScalarGridSpec(
            num_scalar_prefetch=0,
            grid=(B, n_q),
            in_specs=in_specs,
            out_specs=pl.BlockSpec((1, tq, H), lambda b, q: (b, q, 0)),  # lane-dense (last dim = H)
            scratch_shapes=[],
        ),
        compiler_params=pltpu.CompilerParams(
            dimension_semantics=("parallel", "parallel"),
            vmem_limit_bytes=_vmem_limit_bytes(S, H, I, tq, i_chunk, has_mask,
                                               single_buffer_weights, vmem_cap),
        ),
    )(*operands)


def bert_encoder(x, mask, layers_params, num_heads, *,
                 single_buffer_weights=True, approx_recip=True, hidden_dtype=None):
    # hidden_dtype=jnp.bfloat16 halves per-layer activation traffic (LayerNorm math stays f32).
    h = x if hidden_dtype is None else x.astype(hidden_dtype)
    for p in layers_params:
        h = bert_encoder_layer(h, mask, p, num_heads,
                               single_buffer_weights=single_buffer_weights,
                               approx_recip=approx_recip)
    return h if hidden_dtype is None else h.astype(x.dtype)


def _reference_encoder(x, mask, layers_params, num_heads):
    """Pure-JAX f32 reference mirroring the PyTorch forward (eval mode)."""
    H = x.shape[-1]
    head_dim = H // num_heads

    def ln(v, g, b):
        m = jnp.mean(v, -1, keepdims=True)
        var = jnp.mean((v - m) ** 2, -1, keepdims=True)
        return (v - m) / jnp.sqrt(var + _LN_EPS) * g + b

    h = x
    for p in layers_params:
        q = h @ p["wq"] + p["bq"]
        k = h @ p["wk"] + p["bk"]
        v = h @ p["wv"] + p["bv"]
        scores = jnp.einsum("bsh,bth->bst", q, k) / math.sqrt(head_dim)
        if mask is not None:
            scores = scores + mask
        probs = jax.nn.softmax(scores, axis=-1)
        ctx = jnp.einsum("bst,bth->bsh", probs, v)
        attn = ctx @ p["wo"] + p["bo"]
        y1 = ln(h + attn, p["g1"], p["be1"])
        f = jax.nn.gelu(y1 @ p["w1"] + p["b1"], approximate=False)
        f = f @ p["w2"] + p["b2"]
        h = ln(y1 + f, p["g2"], p["be2"])
    return h


if __name__ == "__main__":
    # Small, TPU-friendly config consistent with the module (intermediate = 4 * hidden).
    B, S, H, I = 2, 8, 32, 128
    NUM_HEADS, NUM_LAYERS = 4, 2

    key = jax.random.PRNGKey(0)

    def make_layer(k):
        ks = jax.random.split(k, 12)
        init = lambda kk, shape, scale=0.02: (scale * jax.random.normal(kk, shape)).astype(jnp.float32)
        return {
            "wq": init(ks[0], (H, H)), "bq": init(ks[1], (1, H)),
            "wk": init(ks[2], (H, H)), "bk": init(ks[3], (1, H)),
            "wv": init(ks[4], (H, H)), "bv": init(ks[5], (1, H)),
            "wo": init(ks[6], (H, H)), "bo": init(ks[7], (1, H)),
            "g1": jnp.ones((1, H), jnp.float32), "be1": jnp.zeros((1, H), jnp.float32),
            "w1": init(ks[8], (H, I)), "b1": init(ks[9], (1, I)),
            "w2": init(ks[10], (I, H)), "b2": init(ks[11], (1, H)),
            "g2": jnp.ones((1, H), jnp.float32), "be2": jnp.zeros((1, H), jnp.float32),
        }

    key, kx, km, *lkeys = jax.random.split(key, 3 + NUM_LAYERS)
    layers = [make_layer(k) for k in lkeys]
    x = jax.random.normal(kx, (B, S, H), jnp.float32)
    # Additive attention mask: 0 = attend, -1e4 = masked (finite, so fully-masked rows are safe).
    mask = jnp.where(jax.random.uniform(km, (B, S, S)) < 0.25, -1e4, 0.0).astype(jnp.float32)

    ref_nomask = _reference_encoder(x, None, layers, NUM_HEADS)
    ref_mask = _reference_encoder(x, mask, layers, NUM_HEADS)

    def run(single_buffer):
        o1 = jax.block_until_ready(
            bert_encoder(x, None, layers, NUM_HEADS, single_buffer_weights=single_buffer))
        o2 = jax.block_until_ready(
            bert_encoder(x, mask, layers, NUM_HEADS, single_buffer_weights=single_buffer))
        return o1, o2

    try:
        out_nm, out_m = run(True)
    except Exception:
        # Narrow fallback: only if pl.Buffered(1) single-buffering fails to lower on this build,
        # retry with default (double) buffering.  Correctness checks are outside this try/except.
        out_nm, out_m = run(False)

    # bf16 matmul inputs + approx reciprocal => loosened tolerance vs the f32 reference.
    assert out_nm.shape == (B, S, H)
    assert jnp.allclose(out_nm, ref_nomask, atol=2e-2, rtol=2e-2), "no-mask output mismatch vs reference"
    assert jnp.allclose(out_m, ref_mask, atol=2e-2, rtol=2e-2), "masked output mismatch vs reference"

    print("KERNEL_OK")
</pallas_src>

<mosaic_0001>
module attributes {stable_mosaic.version = 11 : i64} {
  func.func @kernel(%arg0: i32, %arg1: i32, %arg2: memref<1x8x32xf32, #tpu.memory_space<vmem>>, %arg3: memref<1x8x32xbf16, #tpu.memory_space<vmem>>, %arg4: memref<1x8x32xbf16, #tpu.memory_space<vmem>>, %arg5: memref<32x32xbf16, #tpu.memory_space<vmem>>, %arg6: memref<1x32xf32, #tpu.memory_space<vmem>>, %arg7: memref<32x32xbf16, #tpu.memory_space<vmem>>, %arg8: memref<1x32xf32, #tpu.memory_space<vmem>>, %arg9: memref<1x32xf32, #tpu.memory_space<vmem>>, %arg10: memref<1x32xf32, #tpu.memory_space<vmem>>, %arg11: memref<32x128xbf16, #tpu.memory_space<vmem>>, %arg12: memref<1x128xf32, #tpu.memory_space<vmem>>, %arg13: memref<128x32xbf16, #tpu.memory_space<vmem>>, %arg14: memref<1x32xf32, #tpu.memory_space<vmem>>, %arg15: memref<1x32xf32, #tpu.memory_space<vmem>>, %arg16: memref<1x32xf32, #tpu.memory_space<vmem>>, %arg17: memref<1x8x32xf32, #tpu.memory_space<vmem>>) attributes {dimension_semantics = [#tpu.dimension_semantics<parallel>, #tpu.dimension_semantics<parallel>], iteration_bounds = array<i64: 2, 1>, scalar_prefetch = 0 : i64, scratch_operands = 0 : i64, tpu.core_type = #tpu.core_type<tc>, window_params = [{transform_indices = @transform_0, window_bounds = array<i64: 1, 8, 32>}, {transform_indices = @transform_1, window_bounds = array<i64: 1, 8, 32>}, {transform_indices = @transform_2, window_bounds = array<i64: 1, 8, 32>}, {pipeline_mode = #tpu.pipeline_mode<synchronous>, transform_indices = @transform_3, window_bounds = array<i64: 32, 32>}, {pipeline_mode = #tpu.pipeline_mode<synchronous>, transform_indices = @transform_4, window_bounds = array<i64: 1, 32>}, {pipeline_mode = #tpu.pipeline_mode<synchronous>, transform_indices = @transform_5, window_bounds = array<i64: 32, 32>}, {pipeline_mode = #tpu.pipeline_mode<synchronous>, transform_indices = @transform_6, window_bounds = array<i64: 1, 32>}, {pipeline_mode = #tpu.pipeline_mode<synchronous>, transform_indices = @transform_7, window_bounds = array<i64: 1, 32>}, {pipeline_mode = #tpu.pipeline_mode<synchronous>, transform_indices = @transform_8, window_bounds = array<i64: 1, 32>}, {pipeline_mode = #tpu.pipeline_mode<synchronous>, transform_indices = @transform_9, window_bounds = array<i64: 32, 128>}, {pipeline_mode = #tpu.pipeline_mode<synchronous>, transform_indices = @transform_10, window_bounds = array<i64: 1, 128>}, {pipeline_mode = #tpu.pipeline_mode<synchronous>, transform_indices = @transform_11, window_bounds = array<i64: 128, 32>}, {pipeline_mode = #tpu.pipeline_mode<synchronous>, transform_indices = @transform_12, window_bounds = array<i64: 1, 32>}, {pipeline_mode = #tpu.pipeline_mode<synchronous>, transform_indices = @transform_13, window_bounds = array<i64: 1, 32>}, {pipeline_mode = #tpu.pipeline_mode<synchronous>, transform_indices = @transform_14, window_bounds = array<i64: 1, 32>}, {transform_indices = @transform_15, window_bounds = array<i64: 1, 8, 32>}]} {
    %c0 = arith.constant 0 : index
    %c0_0 = arith.constant 0 : index
    %c0_1 = arith.constant 0 : index
    %0 = vector.load %arg2[%c0, %c0_0, %c0_1] : memref<1x8x32xf32, #tpu.memory_space<vmem>>, vector<1x8x32xf32>
    %1 = vector.shape_cast %0 : vector<1x8x32xf32> to vector<8x32xf32>
    %2 = arith.truncf %1 : vector<8x32xf32> to vector<8x32xbf16>
    %c0_2 = arith.constant 0 : index
    %c0_3 = arith.constant 0 : index
    %3 = vector.load %arg5[%c0_2, %c0_3] : memref<32x32xbf16, #tpu.memory_space<vmem>>, vector<32x32xbf16>
    %cst = arith.constant dense<0.000000e+00> : vector<8x32xf32>
    %4 = tpu.matmul %2, %3, %cst {dimension_numbers = #tpu.dot_dimension_numbers<[1], [0], [0], [1], [0, 0, 1, 1], [], []>} : vector<8x32xbf16>, vector<32x32xbf16>, vector<8x32xf32> -> vector<8x32xf32>
    %c0_4 = arith.constant 0 : index
    %c0_5 = arith.constant 0 : index
    %5 = vector.load %arg6[%c0_4, %c0_5] : memref<1x32xf32, #tpu.memory_space<vmem>>, vector<1x32xf32>
    %6 = vector.broadcast %5 : vector<1x32xf32> to vector<8x32xf32>
    %7 = arith.addf %4, %6 : vector<8x32xf32>
    %cst_6 = arith.constant 0.353553385 : f32
    %8 = vector.broadcast %cst_6 : f32 to vector<8x32xf32>
    %9 = arith.mulf %7, %8 : vector<8x32xf32>
    %10 = arith.truncf %9 : vector<8x32xf32> to vector<8x32xbf16>
    %c0_7 = arith.constant 0 : index
    %c0_8 = arith.constant 0 : index
    %c0_9 = arith.constant 0 : index
    %11 = vector.load %arg3[%c0_7, %c0_8, %c0_9] : memref<1x8x32xbf16, #tpu.memory_space<vmem>>, vector<1x8x32xbf16>
    %12 = vector.shape_cast %11 : vector<1x8x32xbf16> to vector<8x32xbf16>
    %cst_10 = arith.constant dense<0.000000e+00> : vector<8x8xf32>
    %13 = tpu.matmul %10, %12, %cst_10 {dimension_numbers = #tpu.dot_dimension_numbers<[1], [1], [0], [0], [0, 0, 1, 0], [], []>} : vector<8x32xbf16>, vector<8x32xbf16>, vector<8x8xf32> -> vector<8x8xf32>
    %cst_11 = arith.constant dense<0xFF800000> : vector<8xf32>
    %14 = vector.multi_reduction <maximumf>, %13, %cst_11 [1] : vector<8x8xf32> to vector<8xf32>
    %15 = vector.shape_cast %14 : vector<8xf32> to vector<8x1xf32>
    %16 = vector.broadcast %15 : vector<8x1xf32> to vector<8x8xf32>
    %17 = arith.subf %13, %16 : vector<8x8xf32>
    %18 = math.exp %17 : vector<8x8xf32>
    %cst_12 = arith.constant dense<0.000000e+00> : vector<8xf32>
    %19 = vector.multi_reduction <add>, %18, %cst_12 [1] : vector<8x8xf32> to vector<8xf32>
    %20 = vector.shape_cast %19 : vector<8xf32> to vector<8x1xf32>
    %21 = tpu.reciprocal %20 {approx = true} : vector<8x1xf32> -> vector<8x1xf32>
    %22 = vector.broadcast %21 : vector<8x1xf32> to vector<8x8xf32>
    %23 = arith.mulf %18, %22 : vector<8x8xf32>
    %24 = arith.truncf %23 : vector<8x8xf32> to vector<8x8xbf16>
    %c0_13 = arith.constant 0 : index
    %c0_14 = arith.constant 0 : index
    %c0_15 = arith.constant 0 : index
    %25 = vector.load %arg4[%c0_13, %c0_14, %c0_15] : memref<1x8x32xbf16, #tpu.memory_space<vmem>>, vector<1x8x32xbf16>
    %26 = vector.shape_cast %25 : vector<1x8x32xbf16> to vector<8x32xbf16>
    %cst_16 = arith.constant dense<0.000000e+00> : vector<8x32xf32>
    %27 = tpu.matmul %24, %26, %cst_16 {dimension_numbers = #tpu.dot_dimension_numbers<[1], [0], [0], [1], [0, 0, 1, 1], [], []>} : vector<8x8xbf16>, vector<8x32xbf16>, vector<8x32xf32> -> vector<8x32xf32>
    %28 = arith.truncf %27 : vector<8x32xf32> to vector<8x32xbf16>
    %c0_17 = arith.constant 0 : index
    %c0_18 = arith.constant 0 : index
    %29 = vector.load %arg7[%c0_17, %c0_18] : memref<32x32xbf16, #tpu.memory_space<vmem>>, vector<32x32xbf16>
    %cst_19 = arith.constant dense<0.000000e+00> : vector<8x32xf32>
    %30 = tpu.matmul %28, %29, %cst_19 {dimension_numbers = #tpu.dot_dimension_numbers<[1], [0], [0], [1], [0, 0, 1, 1], [], []>} : vector<8x32xbf16>, vector<32x32xbf16>, vector<8x32xf32> -> vector<8x32xf32>
    %c0_20 = arith.constant 0 : index
    %c0_21 = arith.constant 0 : index
    %31 = vector.load %arg8[%c0_20, %c0_21] : memref<1x32xf32, #tpu.memory_space<vmem>>, vector<1x32xf32>
    %32 = vector.broadcast %31 : vector<1x32xf32> to vector<8x32xf32>
    %33 = arith.addf %30, %32 : vector<8x32xf32>
    %34 = arith.addf %1, %33 : vector<8x32xf32>
    %c0_22 = arith.constant 0 : index
    %c0_23 = arith.constant 0 : index
    %35 = vector.load %arg9[%c0_22, %c0_23] : memref<1x32xf32, #tpu.memory_space<vmem>>, vector<1x32xf32>
    %c0_24 = arith.constant 0 : index
    %c0_25 = arith.constant 0 : index
    %36 = vector.load %arg10[%c0_24, %c0_25] : memref<1x32xf32, #tpu.memory_space<vmem>>, vector<1x32xf32>
    %cst_26 = arith.constant dense<0.000000e+00> : vector<8xf32>
    %37 = vector.multi_reduction <add>, %34, %cst_26 [1] : vector<8x32xf32> to vector<8xf32>
    %38 = vector.shape_cast %37 : vector<8xf32> to vector<8x1xf32>
    %cst_27 = arith.constant 3.200000e+01 : f32
    %39 = vector.broadcast %cst_27 : f32 to vector<8x1xf32>
    %40 = arith.divf %38, %39 : vector<8x1xf32>
    %41 = vector.broadcast %40 : vector<8x1xf32> to vector<8x32xf32>
    %42 = arith.subf %34, %41 : vector<8x32xf32>
    %43 = arith.mulf %42, %42 : vector<8x32xf32>
    %cst_28 = arith.constant dense<0.000000e+00> : vector<8xf32>
    %44 = vector.multi_reduction <add>, %43, %cst_28 [1] : vector<8x32xf32> to vector<8xf32>
    %45 = vector.shape_cast %44 : vector<8xf32> to vector<8x1xf32>
    %cst_29 = arith.constant 3.200000e+01 : f32
    %46 = vector.broadcast %cst_29 : f32 to vector<8x1xf32>
    %47 = arith.divf %45, %46 : vector<8x1xf32>
    %48 = vector.broadcast %40 : vector<8x1xf32> to vector<8x32xf32>
    %49 = arith.subf %34, %48 : vector<8x32xf32>
    %cst_30 = arith.constant 9.99999996E-13 : f32
    %50 = vector.broadcast %cst_30 : f32 to vector<8x1xf32>
    %51 = arith.addf %47, %50 : vector<8x1xf32>
    %52 = math.rsqrt %51 : vector<8x1xf32>
    %53 = vector.broadcast %52 : vector<8x1xf32> to vector<8x32xf32>
    %54 = arith.mulf %49, %53 : vector<8x32xf32>
    %55 = vector.broadcast %35 : vector<1x32xf32> to vector<8x32xf32>
    %56 = arith.mulf %54, %55 : vector<8x32xf32>
    %57 = vector.broadcast %36 : vector<1x32xf32> to vector<8x32xf32>
    %58 = arith.addf %56, %57 : vector<8x32xf32>
    %59 = arith.truncf %58 : vector<8x32xf32> to vector<8x32xbf16>
    %c0_31 = arith.constant 0 : index
    %c0_32 = arith.constant 0 : index
    %60 = vector.load %arg11[%c0_31, %c0_32] : memref<32x128xbf16, #tpu.memory_space<vmem>>, vector<32x128xbf16>
    %cst_33 = arith.constant dense<0.000000e+00> : vector<8x128xf32>
    %61 = tpu.matmul %59, %60, %cst_33 {dimension_numbers = #tpu.dot_dimension_numbers<[1], [0], [0], [1], [0, 0, 1, 1], [], []>} : vector<8x32xbf16>, vector<32x128xbf16>, vector<8x128xf32> -> vector<8x128xf32>
    %c0_34 = arith.constant 0 : index
    %c0_35 = arith.constant 0 : index
    %62 = vector.load %arg12[%c0_34, %c0_35] : memref<1x128xf32, #tpu.memory_space<vmem>>, vector<1x128xf32>
    %63 = vector.broadcast %62 : vector<1x128xf32> to vector<8x128xf32>
    %64 = arith.addf %61, %63 : vector<8x128xf32>
    %cst_36 = arith.constant 5.000000e-01 : f32
    %65 = vector.broadcast %cst_36 : f32 to vector<8x128xf32>
    %66 = arith.mulf %65, %64 : vector<8x128xf32>
    %cst_37 = arith.constant 0.707106769 : f32
    %67 = vector.broadcast %cst_37 : f32 to vector<8x128xf32>
    %68 = arith.mulf %64, %67 : vector<8x128xf32>
    %69 = math.erf %68 : vector<8x128xf32>
    %cst_38 = arith.constant 1.000000e+00 : f32
    %70 = vector.broadcast %cst_38 : f32 to vector<8x128xf32>
    %71 = arith.addf %70, %69 : vector<8x128xf32>
    %72 = arith.mulf %66, %71 : vector<8x128xf32>
    %73 = arith.truncf %72 : vector<8x128xf32> to vector<8x128xbf16>
    %c0_39 = arith.constant 0 : index
    %c0_40 = arith.constant 0 : index
    %74 = vector.load %arg13[%c0_39, %c0_40] : memref<128x32xbf16, #tpu.memory_space<vmem>>, vector<128x32xbf16>
    %cst_41 = arith.constant dense<0.000000e+00> : vector<8x32xf32>
    %75 = tpu.matmul %73, %74, %cst_41 {dimension_numbers = #tpu.dot_dimension_numbers<[1], [0], [0], [1], [0, 0, 1, 1], [], []>} : vector<8x128xbf16>, vector<128x32xbf16>, vector<8x32xf32> -> vector<8x32xf32>
    %c0_42 = arith.constant 0 : index
    %c0_43 = arith.constant 0 : index
    %76 = vector.load %arg14[%c0_42, %c0_43] : memref<1x32xf32, #tpu.memory_space<vmem>>, vector<1x32xf32>
    %77 = vector.broadcast %76 : vector<1x32xf32> to vector<8x32xf32>
    %78 = arith.addf %75, %77 : vector<8x32xf32>
    %79 = arith.addf %58, %78 : vector<8x32xf32>
    %c0_44 = arith.constant 0 : index
    %c0_45 = arith.constant 0 : index
    %80 = vector.load %arg15[%c0_44, %c0_45] : memref<1x32xf32, #tpu.memory_space<vmem>>, vector<1x32xf32>
    %c0_46 = arith.constant 0 : index
    %c0_47 = arith.constant 0 : index
    %81 = vector.load %arg16[%c0_46, %c0_47] : memref<1x32xf32, #tpu.memory_space<vmem>>, vector<1x32xf32>
    %cst_48 = arith.constant dense<0.000000e+00> : vector<8xf32>
    %82 = vector.multi_reduction <add>, %79, %cst_48 [1] : vector<8x32xf32> to vector<8xf32>
    %83 = vector.shape_cast %82 : vector<8xf32> to vector<8x1xf32>
    %cst_49 = arith.constant 3.200000e+01 : f32
    %84 = vector.broadcast %cst_49 : f32 to vector<8x1xf32>
    %85 = arith.divf %83, %84 : vector<8x1xf32>
    %86 = vector.broadcast %85 : vector<8x1xf32> to vector<8x32xf32>
    %87 = arith.subf %79, %86 : vector<8x32xf32>
    %88 = arith.mulf %87, %87 : vector<8x32xf32>
    %cst_50 = arith.constant dense<0.000000e+00> : vector<8xf32>
    %89 = vector.multi_reduction <add>, %88, %cst_50 [1] : vector<8x32xf32> to vector<8xf32>
    %90 = vector.shape_cast %89 : vector<8xf32> to vector<8x1xf32>
    %cst_51 = arith.constant 3.200000e+01 : f32
    %91 = vector.broadcast %cst_51 : f32 to vector<8x1xf32>
    %92 = arith.divf %90, %91 : vector<8x1xf32>
    %93 = vector.broadcast %85 : vector<8x1xf32> to vector<8x32xf32>
    %94 = arith.subf %79, %93 : vector<8x32xf32>
    %cst_52 = arith.constant 9.99999996E-13 : f32
    %95 = vector.broadcast %cst_52 : f32 to vector<8x1xf32>
    %96 = arith.addf %92, %95 : vector<8x1xf32>
    %97 = math.rsqrt %96 : vector<8x1xf32>
    %98 = vector.broadcast %97 : vector<8x1xf32> to vector<8x32xf32>
    %99 = arith.mulf %94, %98 : vector<8x32xf32>
    %100 = vector.broadcast %80 : vector<1x32xf32> to vector<8x32xf32>
    %101 = arith.mulf %99, %100 : vector<8x32xf32>
    %102 = vector.broadcast %81 : vector<1x32xf32> to vector<8x32xf32>
    %103 = arith.addf %101, %102 : vector<8x32xf32>
    %c0_53 = arith.constant 0 : index
    %c0_54 = arith.constant 0 : index
    %c0_55 = arith.constant 0 : index
    %104 = vector.load %arg17[%c0_53, %c0_54, %c0_55] : memref<1x8x32xf32, #tpu.memory_space<vmem>>, vector<1x8x32xf32>
    %105 = vector.shape_cast %104 : vector<1x8x32xf32> to vector<8x32xf32>
    %106 = vector.shape_cast %103 : vector<8x32xf32> to vector<1x8x32xf32>
    tpu.vector_store %arg17[%c0_53, %c0_54, %c0_55], %106 {strides = array<i32>} : memref<1x8x32xf32, #tpu.memory_space<vmem>>, vector<1x8x32xf32>,
    return
  }
  func.func @transform_0(%arg0: i32, %arg1: i32) -> (i32, i32, i32) {
    %c0_i32 = arith.constant 0 : i32
    %c0_i32_0 = arith.constant 0 : i32
    return %arg0, %arg1, %c0_i32 : i32, i32, i32
  }
  func.func @transform_1(%arg0: i32, %arg1: i32) -> (i32, i32, i32) {
    %c0_i32 = arith.constant 0 : i32
    %c0_i32_0 = arith.constant 0 : i32
    %c0_i32_1 = arith.constant 0 : i32
    return %arg0, %c0_i32, %c0_i32_0 : i32, i32, i32
  }
  func.func @transform_2(%arg0: i32, %arg1: i32) -> (i32, i32, i32) {
    %c0_i32 = arith.constant 0 : i32
    %c0_i32_0 = arith.constant 0 : i32
    %c0_i32_1 = arith.constant 0 : i32
    return %arg0, %c0_i32, %c0_i32_0 : i32, i32, i32
  }
  func.func @transform_3(%arg0: i32, %arg1: i32) -> (i32, i32) {
    %c0_i32 = arith.constant 0 : i32
    %c0_i32_0 = arith.constant 0 : i32
    %c0_i32_1 = arith.constant 0 : i32
    return %c0_i32, %c0_i32_0 : i32, i32
  }
  func.func @transform_4(%arg0: i32, %arg1: i32) -> (i32, i32) {
    %c0_i32 = arith.constant 0 : i32
    %c0_i32_0 = arith.constant 0 : i32
    %c0_i32_1 = arith.constant 0 : i32
    return %c0_i32, %c0_i32_0 : i32, i32
  }
  func.func @transform_5(%arg0: i32, %arg1: i32) -> (i32, i32) {
    %c0_i32 = arith.constant 0 : i32
    %c0_i32_0 = arith.constant 0 : i32
    %c0_i32_1 = arith.constant 0 : i32
    return %c0_i32, %c0_i32_0 : i32, i32
  }
  func.func @transform_6(%arg0: i32, %arg1: i32) -> (i32, i32) {
    %c0_i32 = arith.constant 0 : i32
    %c0_i32_0 = arith.constant 0 : i32
    %c0_i32_1 = arith.constant 0 : i32
    return %c0_i32, %c0_i32_0 : i32, i32
  }
  func.func @transform_7(%arg0: i32, %arg1: i32) -> (i32, i32) {
    %c0_i32 = arith.constant 0 : i32
    %c0_i32_0 = arith.constant 0 : i32
    %c0_i32_1 = arith.constant 0 : i32
    return %c0_i32, %c0_i32_0 : i32, i32
  }
  func.func @transform_8(%arg0: i32, %arg1: i32) -> (i32, i32) {
    %c0_i32 = arith.constant 0 : i32
    %c0_i32_0 = arith.constant 0 : i32
    %c0_i32_1 = arith.constant 0 : i32
    return %c0_i32, %c0_i32_0 : i32, i32
  }
  func.func @transform_9(%arg0: i32, %arg1: i32) -> (i32, i32) {
    %c0_i32 = arith.constant 0 : i32
    %c0_i32_0 = arith.constant 0 : i32
    %c0_i32_1 = arith.constant 0 : i32
    return %c0_i32, %c0_i32_0 : i32, i32
  }
  func.func @transform_10(%arg0: i32, %arg1: i32) -> (i32, i32) {
    %c0_i32 = arith.constant 0 : i32
    %c0_i32_0 = arith.constant 0 : i32
    %c0_i32_1 = arith.constant 0 : i32
    return %c0_i32, %c0_i32_0 : i32, i32
  }
  func.func @transform_11(%arg0: i32, %arg1: i32) -> (i32, i32) {
    %c0_i32 = arith.constant 0 : i32
    %c0_i32_0 = arith.constant 0 : i32
    %c0_i32_1 = arith.constant 0 : i32
    return %c0_i32, %c0_i32_0 : i32, i32
  }
  func.func @transform_12(%arg0: i32, %arg1: i32) -> (i32, i32) {
    %c0_i32 = arith.constant 0 : i32
    %c0_i32_0 = arith.constant 0 : i32
    %c0_i32_1 = arith.constant 0 : i32
    return %c0_i32, %c0_i32_0 : i32, i32
  }
  func.func @transform_13(%arg0: i32, %arg1: i32) -> (i32, i32) {
    %c0_i32 = arith.constant 0 : i32
    %c0_i32_0 = arith.constant 0 : i32
    %c0_i32_1 = arith.constant 0 : i32
    return %c0_i32, %c0_i32_0 : i32, i32
  }
  func.func @transform_14(%arg0: i32, %arg1: i32) -> (i32, i32) {
    %c0_i32 = arith.constant 0 : i32
    %c0_i32_0 = arith.constant 0 : i32
    %c0_i32_1 = arith.constant 0 : i32
    return %c0_i32, %c0_i32_0 : i32, i32
  }
  func.func @transform_15(%arg0: i32, %arg1: i32) -> (i32, i32, i32) {
    %c0_i32 = arith.constant 0 : i32
    %c0_i32_0 = arith.constant 0 : i32
    return %arg0, %arg1, %c0_i32 : i32, i32, i32
  }
}

module attributes {stable_mosaic.version = 11 : i64} {
  func.func @kernel(%arg0: i32, %arg1: i32, %arg2: memref<1x8x32xf32, #tpu.memory_space<vmem>>, %arg3: memref<1x8x32xbf16, #tpu.memory_space<vmem>>, %arg4: memref<1x8x32xbf16, #tpu.memory_space<vmem>>, %arg5: memref<32x32xbf16, #tpu.memory_space<vmem>>, %arg6: memref<1x32xf32, #tpu.memory_space<vmem>>, %arg7: memref<32x32xbf16, #tpu.memory_space<vmem>>, %arg8: memref<1x32xf32, #tpu.memory_space<vmem>>, %arg9: memref<1x32xf32, #tpu.memory_space<vmem>>, %arg10: memref<1x32xf32, #tpu.memory_space<vmem>>, %arg11: memref<32x128xbf16, #tpu.memory_space<vmem>>, %arg12: memref<1x128xf32, #tpu.memory_space<vmem>>, %arg13: memref<128x32xbf16, #tpu.memory_space<vmem>>, %arg14: memref<1x32xf32, #tpu.memory_space<vmem>>, %arg15: memref<1x32xf32, #tpu.memory_space<vmem>>, %arg16: memref<1x32xf32, #tpu.memory_space<vmem>>, %arg17: memref<1x8x32xf32, #tpu.memory_space<vmem>>) attributes {dimension_semantics = [#tpu.dimension_semantics<parallel>, #tpu.dimension_semantics<parallel>], iteration_bounds = array<i64: 2, 1>, scalar_prefetch = 0 : i64, scratch_operands = 0 : i64, tpu.core_type = #tpu.core_type<tc>, window_params = [{transform_indices = @transform_0, window_bounds = array<i64: 1, 8, 32>}, {transform_indices = @transform_1, window_bounds = array<i64: 1, 8, 32>}, {transform_indices = @transform_2, window_bounds = array<i64: 1, 8, 32>}, {pipeline_mode = #tpu.pipeline_mode<synchronous>, transform_indices = @transform_3, window_bounds = array<i64: 32, 32>}, {pipeline_mode = #tpu.pipeline_mode<synchronous>, transform_indices = @transform_4, window_bounds = array<i64: 1, 32>}, {pipeline_mode = #tpu.pipeline_mode<synchronous>, transform_indices = @transform_5, window_bounds = array<i64: 32, 32>}, {pipeline_mode = #tpu.pipeline_mode<synchronous>, transform_indices = @transform_6, window_bounds = array<i64: 1, 32>}, {pipeline_mode = #tpu.pipeline_mode<synchronous>, transform_indices = @transform_7, window_bounds = array<i64: 1, 32>}, {pipeline_mode = #tpu.pipeline_mode<synchronous>, transform_indices = @transform_8, window_bounds = array<i64: 1, 32>}, {pipeline_mode = #tpu.pipeline_mode<synchronous>, transform_indices = @transform_9, window_bounds = array<i64: 32, 128>}, {pipeline_mode = #tpu.pipeline_mode<synchronous>, transform_indices = @transform_10, window_bounds = array<i64: 1, 128>}, {pipeline_mode = #tpu.pipeline_mode<synchronous>, transform_indices = @transform_11, window_bounds = array<i64: 128, 32>}, {pipeline_mode = #tpu.pipeline_mode<synchronous>, transform_indices = @transform_12, window_bounds = array<i64: 1, 32>}, {pipeline_mode = #tpu.pipeline_mode<synchronous>, transform_indices = @transform_13, window_bounds = array<i64: 1, 32>}, {pipeline_mode = #tpu.pipeline_mode<synchronous>, transform_indices = @transform_14, window_bounds = array<i64: 1, 32>}, {transform_indices = @transform_15, window_bounds = array<i64: 1, 8, 32>}]} {
    %c0 = arith.constant 0 : index
    %c0_0 = arith.constant 0 : index
    %c0_1 = arith.constant 0 : index
    %0 = vector.load %arg2[%c0, %c0_0, %c0_1] : memref<1x8x32xf32, #tpu.memory_space<vmem>>, vector<1x8x32xf32>
    %1 = vector.shape_cast %0 : vector<1x8x32xf32> to vector<8x32xf32>
    %2 = arith.truncf %1 : vector<8x32xf32> to vector<8x32xbf16>
    %c0_2 = arith.constant 0 : index
    %c0_3 = arith.constant 0 : index
    %3 = vector.load %arg5[%c0_2, %c0_3] : memref<32x32xbf16, #tpu.memory_space<vmem>>, vector<32x32xbf16>
    %cst = arith.constant dense<0.000000e+00> : vector<8x32xf32>
    %4 = tpu.matmul %2, %3, %cst {dimension_numbers = #tpu.dot_dimension_numbers<[1], [0], [0], [1], [0, 0, 1, 1], [], []>} : vector<8x32xbf16>, vector<32x32xbf16>, vector<8x32xf32> -> vector<8x32xf32>
    %c0_4 = arith.constant 0 : index
    %c0_5 = arith.constant 0 : index
    %5 = vector.load %arg6[%c0_4, %c0_5] : memref<1x32xf32, #tpu.memory_space<vmem>>, vector<1x32xf32>
    %6 = vector.broadcast %5 : vector<1x32xf32> to vector<8x32xf32>
    %7 = arith.addf %4, %6 : vector<8x32xf32>
    %cst_6 = arith.constant 0.353553385 : f32
    %8 = vector.broadcast %cst_6 : f32 to vector<8x32xf32>
    %9 = arith.mulf %7, %8 : vector<8x32xf32>
    %10 = arith.truncf %9 : vector<8x32xf32> to vector<8x32xbf16>
    %c0_7 = arith.constant 0 : index
    %c0_8 = arith.constant 0 : index
    %c0_9 = arith.constant 0 : index
    %11 = vector.load %arg3[%c0_7, %c0_8, %c0_9] : memref<1x8x32xbf16, #tpu.memory_space<vmem>>, vector<1x8x32xbf16>
    %12 = vector.shape_cast %11 : vector<1x8x32xbf16> to vector<8x32xbf16>
    %cst_10 = arith.constant dense<0.000000e+00> : vector<8x8xf32>
    %13 = tpu.matmul %10, %12, %cst_10 {dimension_numbers = #tpu.dot_dimension_numbers<[1], [1], [0], [0], [0, 0, 1, 0], [], []>} : vector<8x32xbf16>, vector<8x32xbf16>, vector<8x8xf32> -> vector<8x8xf32>
    %cst_11 = arith.constant dense<0xFF800000> : vector<8xf32>
    %14 = vector.multi_reduction <maximumf>, %13, %cst_11 [1] : vector<8x8xf32> to vector<8xf32>
    %15 = vector.shape_cast %14 : vector<8xf32> to vector<8x1xf32>
    %16 = vector.broadcast %15 : vector<8x1xf32> to vector<8x8xf32>
    %17 = arith.subf %13, %16 : vector<8x8xf32>
    %18 = math.exp %17 : vector<8x8xf32>
    %cst_12 = arith.constant dense<0.000000e+00> : vector<8xf32>
    %19 = vector.multi_reduction <add>, %18, %cst_12 [1] : vector<8x8xf32> to vector<8xf32>
    %20 = vector.shape_cast %19 : vector<8xf32> to vector<8x1xf32>
    %21 = tpu.reciprocal %20 {approx = true} : vector<8x1xf32> -> vector<8x1xf32>
    %22 = vector.broadcast %21 : vector<8x1xf32> to vector<8x8xf32>
    %23 = arith.mulf %18, %22 : vector<8x8xf32>
    %24 = arith.truncf %23 : vector<8x8xf32> to vector<8x8xbf16>
    %c0_13 = arith.constant 0 : index
    %c0_14 = arith.constant 0 : index
    %c0_15 = arith.constant 0 : index
    %25 = vector.load %arg4[%c0_13, %c0_14, %c0_15] : memref<1x8x32xbf16, #tpu.memory_space<vmem>>, vector<1x8x32xbf16>
    %26 = vector.shape_cast %25 : vector<1x8x32xbf16> to vector<8x32xbf16>
    %cst_16 = arith.constant dense<0.000000e+00> : vector<8x32xf32>
    %27 = tpu.matmul %24, %26, %cst_16 {dimension_numbers = #tpu.dot_dimension_numbers<[1], [0], [0], [1], [0, 0, 1, 1], [], []>} : vector<8x8xbf16>, vector<8x32xbf16>, vector<8x32xf32> -> vector<8x32xf32>
    %28 = arith.truncf %27 : vector<8x32xf32> to vector<8x32xbf16>
    %c0_17 = arith.constant 0 : index
    %c0_18 = arith.constant 0 : index
    %29 = vector.load %arg7[%c0_17, %c0_18] : memref<32x32xbf16, #tpu.memory_space<vmem>>, vector<32x32xbf16>
    %cst_19 = arith.constant dense<0.000000e+00> : vector<8x32xf32>
    %30 = tpu.matmul %28, %29, %cst_19 {dimension_numbers = #tpu.dot_dimension_numbers<[1], [0], [0], [1], [0, 0, 1, 1], [], []>} : vector<8x32xbf16>, vector<32x32xbf16>, vector<8x32xf32> -> vector<8x32xf32>
    %c0_20 = arith.constant 0 : index
    %c0_21 = arith.constant 0 : index
    %31 = vector.load %arg8[%c0_20, %c0_21] : memref<1x32xf32, #tpu.memory_space<vmem>>, vector<1x32xf32>
    %32 = vector.broadcast %31 : vector<1x32xf32> to vector<8x32xf32>
    %33 = arith.addf %30, %32 : vector<8x32xf32>
    %34 = arith.addf %1, %33 : vector<8x32xf32>
    %c0_22 = arith.constant 0 : index
    %c0_23 = arith.constant 0 : index
    %35 = vector.load %arg9[%c0_22, %c0_23] : memref<1x32xf32, #tpu.memory_space<vmem>>, vector<1x32xf32>
    %c0_24 = arith.constant 0 : index
    %c0_25 = arith.constant 0 : index
    %36 = vector.load %arg10[%c0_24, %c0_25] : memref<1x32xf32, #tpu.memory_space<vmem>>, vector<1x32xf32>
    %cst_26 = arith.constant dense<0.000000e+00> : vector<8xf32>
    %37 = vector.multi_reduction <add>, %34, %cst_26 [1] : vector<8x32xf32> to vector<8xf32>
    %38 = vector.shape_cast %37 : vector<8xf32> to vector<8x1xf32>
    %cst_27 = arith.constant 3.200000e+01 : f32
    %39 = vector.broadcast %cst_27 : f32 to vector<8x1xf32>
    %40 = arith.divf %38, %39 : vector<8x1xf32>
    %41 = vector.broadcast %40 : vector<8x1xf32> to vector<8x32xf32>
    %42 = arith.subf %34, %41 : vector<8x32xf32>
    %43 = arith.mulf %42, %42 : vector<8x32xf32>
    %cst_28 = arith.constant dense<0.000000e+00> : vector<8xf32>
    %44 = vector.multi_reduction <add>, %43, %cst_28 [1] : vector<8x32xf32> to vector<8xf32>
    %45 = vector.shape_cast %44 : vector<8xf32> to vector<8x1xf32>
    %cst_29 = arith.constant 3.200000e+01 : f32
    %46 = vector.broadcast %cst_29 : f32 to vector<8x1xf32>
    %47 = arith.divf %45, %46 : vector<8x1xf32>
    %48 = vector.broadcast %40 : vector<8x1xf32> to vector<8x32xf32>
    %49 = arith.subf %34, %48 : vector<8x32xf32>
    %cst_30 = arith.constant 9.99999996E-13 : f32
    %50 = vector.broadcast %cst_30 : f32 to vector<8x1xf32>
    %51 = arith.addf %47, %50 : vector<8x1xf32>
    %52 = math.rsqrt %51 : vector<8x1xf32>
    %53 = vector.broadcast %52 : vector<8x1xf32> to vector<8x32xf32>
    %54 = arith.mulf %49, %53 : vector<8x32xf32>
    %55 = vector.broadcast %35 : vector<1x32xf32> to vector<8x32xf32>
    %56 = arith.mulf %54, %55 : vector<8x32xf32>
    %57 = vector.broadcast %36 : vector<1x32xf32> to vector<8x32xf32>
    %58 = arith.addf %56, %57 : vector<8x32xf32>
    %59 = arith.truncf %58 : vector<8x32xf32> to vector<8x32xbf16>
    %c0_31 = arith.constant 0 : index
    %c0_32 = arith.constant 0 : index
    %60 = vector.load %arg11[%c0_31, %c0_32] : memref<32x128xbf16, #tpu.memory_space<vmem>>, vector<32x128xbf16>
    %cst_33 = arith.constant dense<0.000000e+00> : vector<8x128xf32>
    %61 = tpu.matmul %59, %60, %cst_33 {dimension_numbers = #tpu.dot_dimension_numbers<[1], [0], [0], [1], [0, 0, 1, 1], [], []>} : vector<8x32xbf16>, vector<32x128xbf16>, vector<8x128xf32> -> vector<8x128xf32>
    %c0_34 = arith.constant 0 : index
    %c0_35 = arith.constant 0 : index
    %62 = vector.load %arg12[%c0_34, %c0_35] : memref<1x128xf32, #tpu.memory_space<vmem>>, vector<1x128xf32>
    %63 = vector.broadcast %62 : vector<1x128xf32> to vector<8x128xf32>
    %64 = arith.addf %61, %63 : vector<8x128xf32>
    %cst_36 = arith.constant 5.000000e-01 : f32
    %65 = vector.broadcast %cst_36 : f32 to vector<8x128xf32>
    %66 = arith.mulf %65, %64 : vector<8x128xf32>
    %cst_37 = arith.constant 0.707106769 : f32
    %67 = vector.broadcast %cst_37 : f32 to vector<8x128xf32>
    %68 = arith.mulf %64, %67 : vector<8x128xf32>
    %69 = math.erf %68 : vector<8x128xf32>
    %cst_38 = arith.constant 1.000000e+00 : f32
    %70 = vector.broadcast %cst_38 : f32 to vector<8x128xf32>
    %71 = arith.addf %70, %69 : vector<8x128xf32>
    %72 = arith.mulf %66, %71 : vector<8x128xf32>
    %73 = arith.truncf %72 : vector<8x128xf32> to vector<8x128xbf16>
    %c0_39 = arith.constant 0 : index
    %c0_40 = arith.constant 0 : index
    %74 = vector.load %arg13[%c0_39, %c0_40] : memref<128x32xbf16, #tpu.memory_space<vmem>>, vector<128x32xbf16>
    %cst_41 = arith.constant dense<0.000000e+00> : vector<8x32xf32>
    %75 = tpu.matmul %73, %74, %cst_41 {dimension_numbers = #tpu.dot_dimension_numbers<[1], [0], [0], [1], [0, 0, 1, 1], [], []>} : vector<8x128xbf16>, vector<128x32xbf16>, vector<8x32xf32> -> vector<8x32xf32>
    %c0_42 = arith.constant 0 : index
    %c0_43 = arith.constant 0 : index
    %76 = vector.load %arg14[%c0_42, %c0_43] : memref<1x32xf32, #tpu.memory_space<vmem>>, vector<1x32xf32>
    %77 = vector.broadcast %76 : vector<1x32xf32> to vector<8x32xf32>
    %78 = arith.addf %75, %77 : vector<8x32xf32>
    %79 = arith.addf %58, %78 : vector<8x32xf32>
    %c0_44 = arith.constant 0 : index
    %c0_45 = arith.constant 0 : index
    %80 = vector.load %arg15[%c0_44, %c0_45] : memref<1x32xf32, #tpu.memory_space<vmem>>, vector<1x32xf32>
    %c0_46 = arith.constant 0 : index
    %c0_47 = arith.constant 0 : index
    %81 = vector.load %arg16[%c0_46, %c0_47] : memref<1x32xf32, #tpu.memory_space<vmem>>, vector<1x32xf32>
    %cst_48 = arith.constant dense<0.000000e+00> : vector<8xf32>
    %82 = vector.multi_reduction <add>, %79, %cst_48 [1] : vector<8x32xf32> to vector<8xf32>
    %83 = vector.shape_cast %82 : vector<8xf32> to vector<8x1xf32>
    %cst_49 = arith.constant 3.200000e+01 : f32
    %84 = vector.broadcast %cst_49 : f32 to vector<8x1xf32>
    %85 = arith.divf %83, %84 : vector<8x1xf32>
    %86 = vector.broadcast %85 : vector<8x1xf32> to vector<8x32xf32>
    %87 = arith.subf %79, %86 : vector<8x32xf32>
    %88 = arith.mulf %87, %87 : vector<8x32xf32>
    %cst_50 = arith.constant dense<0.000000e+00> : vector<8xf32>
    %89 = vector.multi_reduction <add>, %88, %cst_50 [1] : vector<8x32xf32> to vector<8xf32>
    %90 = vector.shape_cast %89 : vector<8xf32> to vector<8x1xf32>
    %cst_51 = arith.constant 3.200000e+01 : f32
    %91 = vector.broadcast %cst_51 : f32 to vector<8x1xf32>
    %92 = arith.divf %90, %91 : vector<8x1xf32>
    %93 = vector.broadcast %85 : vector<8x1xf32> to vector<8x32xf32>
    %94 = arith.subf %79, %93 : vector<8x32xf32>
    %cst_52 = arith.constant 9.99999996E-13 : f32
    %95 = vector.broadcast %cst_52 : f32 to vector<8x1xf32>
    %96 = arith.addf %92, %95 : vector<8x1xf32>
    %97 = math.rsqrt %96 : vector<8x1xf32>
    %98 = vector.broadcast %97 : vector<8x1xf32> to vector<8x32xf32>
    %99 = arith.mulf %94, %98 : vector<8x32xf32>
    %100 = vector.broadcast %80 : vector<1x32xf32> to vector<8x32xf32>
    %101 = arith.mulf %99, %100 : vector<8x32xf32>
    %102 = vector.broadcast %81 : vector<1x32xf32> to vector<8x32xf32>
    %103 = arith.addf %101, %102 : vector<8x32xf32>
    %c0_53 = arith.constant 0 : index
    %c0_54 = arith.constant 0 : index
    %c0_55 = arith.constant 0 : index
    %104 = vector.load %arg17[%c0_53, %c0_54, %c0_55] : memref<1x8x32xf32, #tpu.memory_space<vmem>>, vector<1x8x32xf32>
    %105 = vector.shape_cast %104 : vector<1x8x32xf32> to vector<8x32xf32>
    %106 = vector.shape_cast %103 : vector<8x32xf32> to vector<1x8x32xf32>
    tpu.vector_store %arg17[%c0_53, %c0_54, %c0_55], %106 {strides = array<i32>} : memref<1x8x32xf32, #tpu.memory_space<vmem>>, vector<1x8x32xf32>,
    return
  }
  func.func @transform_0(%arg0: i32, %arg1: i32) -> (i32, i32, i32) {
    %c0_i32 = arith.constant 0 : i32
    %c0_i32_0 = arith.constant 0 : i32
    return %arg0, %arg1, %c0_i32 : i32, i32, i32
  }
  func.func @transform_1(%arg0: i32, %arg1: i32) -> (i32, i32, i32) {
    %c0_i32 = arith.constant 0 : i32
    %c0_i32_0 = arith.constant 0 : i32
    %c0_i32_1 = arith.constant 0 : i32
    return %arg0, %c0_i32, %c0_i32_0 : i32, i32, i32
  }
  func.func @transform_2(%arg0: i32, %arg1: i32) -> (i32, i32, i32) {
    %c0_i32 = arith.constant 0 : i32
    %c0_i32_0 = arith.constant 0 : i32
    %c0_i32_1 = arith.constant 0 : i32
    return %arg0, %c0_i32, %c0_i32_0 : i32, i32, i32
  }
  func.func @transform_3(%arg0: i32, %arg1: i32) -> (i32, i32) {
    %c0_i32 = arith.constant 0 : i32
    %c0_i32_0 = arith.constant 0 : i32
    %c0_i32_1 = arith.constant 0 : i32
    return %c0_i32, %c0_i32_0 : i32, i32
  }
  func.func @transform_4(%arg0: i32, %arg1: i32) -> (i32, i32) {
    %c0_i32 = arith.constant 0 : i32
    %c0_i32_0 = arith.constant 0 : i32
    %c0_i32_1 = arith.constant 0 : i32
    return %c0_i32, %c0_i32_0 : i32, i32
  }
  func.func @transform_5(%arg0: i32, %arg1: i32) -> (i32, i32) {
    %c0_i32 = arith.constant 0 : i32
    %c0_i32_0 = arith.constant 0 : i32
    %c0_i32_1 = arith.constant 0 : i32
    return %c0_i32, %c0_i32_0 : i32, i32
  }
  func.func @transform_6(%arg0: i32, %arg1: i32) -> (i32, i32) {
    %c0_i32 = arith.constant 0 : i32
    %c0_i32_0 = arith.constant 0 : i32
    %c0_i32_1 = arith.constant 0 : i32
    return %c0_i32, %c0_i32_0 : i32, i32
  }
  func.func @transform_7(%arg0: i32, %arg1: i32) -> (i32, i32) {
    %c0_i32 = arith.constant 0 : i32
    %c0_i32_0 = arith.constant 0 : i32
    %c0_i32_1 = arith.constant 0 : i32
    return %c0_i32, %c0_i32_0 : i32, i32
  }
  func.func @transform_8(%arg0: i32, %arg1: i32) -> (i32, i32) {
    %c0_i32 = arith.constant 0 : i32
    %c0_i32_0 = arith.constant 0 : i32
    %c0_i32_1 = arith.constant 0 : i32
    return %c0_i32, %c0_i32_0 : i32, i32
  }
  func.func @transform_9(%arg0: i32, %arg1: i32) -> (i32, i32) {
    %c0_i32 = arith.constant 0 : i32
    %c0_i32_0 = arith.constant 0 : i32
    %c0_i32_1 = arith.constant 0 : i32
    return %c0_i32, %c0_i32_0 : i32, i32
  }
  func.func @transform_10(%arg0: i32, %arg1: i32) -> (i32, i32) {
    %c0_i32 = arith.constant 0 : i32
    %c0_i32_0 = arith.constant 0 : i32
    %c0_i32_1 = arith.constant 0 : i32
    return %c0_i32, %c0_i32_0 : i32, i32
  }
  func.func @transform_11(%arg0: i32, %arg1: i32) -> (i32, i32) {
    %c0_i32 = arith.constant 0 : i32
    %c0_i32_0 = arith.constant 0 : i32
    %c0_i32_1 = arith.constant 0 : i32
    return %c0_i32, %c0_i32_0 : i32, i32
  }
  func.func @transform_12(%arg0: i32, %arg1: i32) -> (i32, i32) {
    %c0_i32 = arith.constant 0 : i32
    %c0_i32_0 = arith.constant 0 : i32
    %c0_i32_1 = arith.constant 0 : i32
    return %c0_i32, %c0_i32_0 : i32, i32
  }
  func.func @transform_13(%arg0: i32, %arg1: i32) -> (i32, i32) {
    %c0_i32 = arith.constant 0 : i32
    %c0_i32_0 = arith.constant 0 : i32
    %c0_i32_1 = arith.constant 0 : i32
    return %c0_i32, %c0_i32_0 : i32, i32
  }
  func.func @transform_14(%arg0: i32, %arg1: i32) -> (i32, i32) {
    %c0_i32 = arith.constant 0 : i32
    %c0_i32_0 = arith.constant 0 : i32
    %c0_i32_1 = arith.constant 0 : i32
    return %c0_i32, %c0_i32_0 : i32, i32
  }
  func.func @transform_15(%arg0: i32, %arg1: i32) -> (i32, i32, i32) {
    %c0_i32 = arith.constant 0 : i32
    %c0_i32_0 = arith.constant 0 : i32
    return %arg0, %arg1, %c0_i32 : i32, i32, i32
  }
}

</mosaic_0001>

<bundles_post_ra>
// kernel: tpu_custom_call.1
= control target key start
LH: loop header
LB: loop body
LE: loop exit
PB: predicated region body
PF: predicated region fallthrough
CT: control target
= control target key end

     0   :  { %s1558_s0 = inlined_call_operand.vmem [shape: f32[2,8,32], index: 0, kind: input, shape index: {}]   ;;  %s1559_s1 = inlined_call_operand.vmem [shape: bf16[2,8,32], index: 1, kind: input, shape index: {}]   ;;  %s1560_s2 = inlined_call_operand.vmem [shape: bf16[2,8,32], index: 2, kind: input, shape index: {}]   ;;  %s1561_s3 = inlined_call_operand.vmem [shape: bf16[32,32], index: 3, kind: input, shape index: {}]   ;;  %s1562_s4 = inlined_call_operand.vmem [shape: f32[1,32], index: 4, kind: input, shape index: {}]   ;;  %s1563_s5 = inlined_call_operand.vmem [shape: bf16[32,32], index: 5, kind: input, shape index: {}]   ;;  %s1564_s6 = inlined_call_operand.vmem [shape: f32[1,32], index: 6, kind: input, shape index: {}]   ;;  %s1565_s7 = inlined_call_operand.vmem [shape: f32[1,32], index: 7, kind: input, shape index: {}]   ;;  %s1566_s8 = inlined_call_operand.vmem [shape: f32[1,32], index: 8, kind: input, shape index: {}]   ;;  %s1567_s9 = inlined_call_operand.vmem [shape: bf16[32,128], index: 9, kind: input, shape index: {}]   ;;  %s1568_s10 = inlined_call_operand.vmem [shape: f32[1,128], index: 10, kind: input, shape index: {}]   ;;  %s1569_s11 = inlined_call_operand.vmem [shape: bf16[128,32], index: 11, kind: input, shape index: {}]   ;;  %s1570_s12 = inlined_call_operand.vmem [shape: f32[1,32], index: 12, kind: input, shape index: {}]   ;;  %s1571_s13 = inlined_call_operand.vmem [shape: f32[1,32], index: 13, kind: input, shape index: {}]   ;;  %s1572_s14 = inlined_call_operand.vmem [shape: f32[1,32], index: 14, kind: input, shape index: {}]   ;;  %s1573_s15 = inlined_call_operand.hbm [shape: f32[2,8,32], index: 15, kind: output, shape index: {}]  }
   0x1   :  { %1579 = sst [smem:[#allocation11_spill]] %s1558_s0 }
   0x2   :  { %20 = vsyncpa [#allocation3], 0 }
   0x3   :  { %22 = vsyncpa [#allocation3 + $0x1], 0  ;;  %s1357_s18 = smov 0   ;;  %s1359_s19 = smov 0  }
   0x4   :  { %s1361_s20 = smov 0   ;;  %s1363_s21 = smov 0  }
   0x5   :  { %s1365_s22 = smov 0   ;;  %s1367_s23 = smov 0  }
   0x6 LB: > { %1580 = sst [smem:[#allocation5_spill]] %s1254_s18  ;;  %s1031_s24 = sadd.s32 4294967295, %s1274_s23   ;;  %s1274_s23 = sphi %s1367_s23, %s28_s23   ;;  %s1270_s22 = sphi %s1365_s22, %s1594_s22   ;;  %s1266_s21 = sphi %s1363_s21, %s1593_s21   ;;  %s1262_s20 = sphi %s1361_s20, %s1592_s20   ;;  %s1258_s19 = sphi %s1359_s19, %s1596_s19   ;;  %s1254_s18 = sphi %s1357_s18, %s1595_s18  }
   0x7   : > { %1581 = sst [smem:[#allocation6_spill]] %s1262_s20  ;;  %s1032_s25 = sadd.s32 4294967294, %s1274_s23  }
   0x8   : > { %1582 = sst [smem:[#allocation7_spill]] %s1270_s22  ;;  %s40_s26 = sadd.s32 1, %s1270_s22 }
   0x9   : > { %s381_s27 = sadd.s32 1, %s1262_s20  ;;  %p42_p0 = scmp.ge.s32.totalorder %s40_s26, 2 }
   0xa   : > { %p391_p1 = scmp.ne.s32.totalorder %s1262_s20, %s1258_s19  ;;  %p392_p2 = scmp.eq.s32.totalorder %s1031_s24, 1 }
   0xb   : > { %p397_p3 = scmp.ne.s32.totalorder %s1258_s19, %s1254_s18  ;;  %s1598_s26 = smov (%p42_p0, %s40_s26), 0 }
   0xc   : > { %1583 = sst [smem:[#allocation8_spill]] %s1598_s26  ;;  %p1397_p4 = por %p392_p2, %p391_p1 }
   0xd   : > { %p398_p5 = scmp.eq.s32.totalorder %s1032_s25, 1  ;;  %s376_s29 = ssub.s32 %s1270_s22, %s1598_s26 }
   0xe   : > { %p1035_p6 = scmp.ge.s32.totalorder %s1274_s23, 1  ;;  %p379_p7 = scmp.eq.s32.totalorder %s376_s29, 0 }
   0xf   : > { %p1404_p8 = por %p398_p5, %p397_p3  ;;  %p476_p9 = scmp.lt.s32.totalorder %s1274_s23, 3 }
  0x10   : > { %s1410_s16 = scalar_select %p379_p7, %s1262_s20, %s381_s27  }
  0x11   : > { %s1585_s30 = scalar_select %p1404_p8, 1, 0 }
  0x12   : > { %1587 = sst [smem:[#allocation10_spill]] %s1410_s16  ;;  %p477_p10 = pnand %p1035_p6, %p476_p9 }
  0x13   : > { %1586 = sst [smem:[#allocation9_spill]] %s1585_s30  ;;  %p534_p11 = scmp.lt.s32.totalorder (!%p477_p10), %s1266_s21, 1 }
  0x14   : > { %480 = sbr.rel (%p477_p10) target bundleno = 1675 (0x68b), region = 80  ;;  %s1588_s0 = sld [smem:[#allocation11_spill]] (!%p477_p10) }
  0x19   : > { %v1107_v0 = vld [vmem:[%s1561_s3 + $0x8] sm:$0xff]  ;;  %v1106_v1 = vld [vmem:[%s1561_s3] sm:$0xff]  ;;  %s1420_s29 = scalar_select %p534_p11, %s1266_s21, 1  ;;  %vm572_vm0 = vcmask 261120   ;;  %vm611_vm1 = vcmask 64512   ;;  %vm628_vm2 = vcmask 1043456  }
  0x1a   : > { %582 = vmatpush.bf16.msra.mxu1 %v1107_v0  ;;  %v1176_v6 = vld [vmem:[%s1562_s4] ss:$0 sm:$0xff]  ;;  %v1109_v22 = vld [vmem:[%s1563_s5 + $0x8] sm:$0xff]  ;;  %v1276_v37 = vmov 32.0  }
  0x1b   : > { %s1037_s27 = sshll.u32 %s1420_s29, 3  ;;  %s1038_s22 = sshll.u32 %s1420_s29, 2  ;;  %675 = vmatpush.bf16.msra.mxu3 %v1109_v22  ;;  %v1108_v27 = vld [vmem:[%s1563_s5] sm:$0xff]  ;;  %v1111_v49 = vld [vmem:[%s1567_s9 + $0x8] sm:$0xff] }
  0x1c   : > { %s540_s17 = scalar_lea.vmem %s1588_s0, %s1037_s27  ;;  %s544_s18 = scalar_lea.vmem %s1559_s1, %s1038_s22  ;;  %v1177_v31 = vld [vmem:[%s1564_s6] ss:$0 sm:$0xff] }
  0x1d   : > { %v550_v2 = vld [vmem:[%s540_s17] sm:$0xff]  ;;  %s548_s30 = scalar_lea.vmem %s1560_s2, %s1038_s22  ;;  %s531_s27 = sand.u32 1, %s1258_s19  }
  0x1e   : > { %583 = vmatpush.bf16.msra.mxu1 %v1106_v1  ;;  %v591_v3 = vld [vmem:[%s544_s18] sm:$0xf]  ;;  %v551_v4 = vpack.c.bf16 %v550_v2, %v550_v2  ;;  %s1036_s29 = sshll.u32 %s531_s27, 3  ;;  %s1103_s17 = sshll.u32 %s1266_s21, 3 }
  0x1f   : > { %v596_v5 = vsel %vm572_vm0, %v591_v3, 0  ;;  %v624_v20 = vld [vmem:[%s548_s30] sm:$0xf]  ;;  %676 = vmatpush.bf16.msra.mxu3 %v1108_v27  ;;  %v1119_v3 = vld [vmem:[%s1569_s11 + $0x38] sm:$0xff]  ;;  %s931_s18 = scalar_lea.hbm %s1573_s15, %s1103_s17  ;;  %s533_s16 = scalar_lea.vmem [#allocation2], %s1036_s29 }
  0x20   : > { %v630_v21 = vsel %vm628_vm2, %v624_v20, 0  ;;  %v1110_v50 = vld [vmem:[%s1567_s9] sm:$0xff]  ;;  %872 = vmatpush.bf16.msra.mxu0 %v1119_v3  ;;  %s933_s21 = sshll.u32 %s533_s16, 4  ;;  %s935_s0 = sshll.u32 %s931_s18, 4  ;;  %s934_s21 = int_to_ptr.vmem [resolvable:$true] %s933_s21  ;;  %s936_s0 = int_to_ptr.hbm [resolvable:$true] %s935_s0 }
  0x21   : > { %1048 = vmatmul.msk.bf16.vlgmr.msra.gmra.mxu1 %vm572_vm0, %v551_v4  ;;  %639 = vmatpush.bf16.msra.mxu2 %v630_v21  ;;  %v1178_v60 = vld [vmem:[%s1565_s7] ss:$0 sm:$0xff]  ;;  %v1118_v4 = vld [vmem:[%s1569_s11 + $0x30] sm:$0xff]  ;;  %v1113_v21 = vld [vmem:[%s1569_s11 + $0x8] sm:$0xff]  ;;  %s920_s22 = scalar_lea.sflag [#allocation3], %s531_s27  ;;  %s1210_s24 = sshra.s32 %s936_s0, 4  ;;  %s1211_s24 = int_to_ptr.hbm [resolvable:$true] %s1210_s24 }
  0x22   : > { %605 = vmatpush.bf16.xpose.msrb.mxu1 %v596_v5  ;;  %v1179_v63 = vld [vmem:[%s1566_s8] ss:$0 sm:$0xff]  ;;  %s1212_s17 = scalar_lea.hbm %s1211_s24, 8  ;;  %s1216_s29 = scalar_lea.hbm %s1573_s15, 16 }
  0x23   : > { %v1180_v5 = vld [vmem:[%s1568_s10] ss:$0 sm:$0xff]  ;;  %p1213_p12 = scmp.ne.s32.totalorder %s1211_s24, %s1212_s17  ;;  %p1217_p1 = scmp.lt.s32.totalorder %s1211_s24, %s1573_s15 }
  0x24   : > { %873 = vmatpush.bf16.msra.mxu0 %v1118_v4  ;;  %p1218_p2 = scmp.lt.s32.totalorder %s1216_s29, %s1212_s17 }
  0x25   : > { %752 = vmatpush.bf16.msrb.mxu2 %v1111_v49  ;;  %p1214_p13 = pnand %p1213_p12, %p1397_p4 }
  0x26   : > { %p1219_p3 = por %p1218_p2, %p1217_p1 }
  0x27   : > { %p1215_p0 = pneg %p1214_p13 }
  0x29   : > { %753 = vmatpush.bf16.msrb.mxu2 %v1110_v50  ;;  %p1220_p5 = pnand %p1219_p3, %p1215_p0 }
  0x9e   : > { %v585_v7 = vpop.f32.mrf.mxu1 }
  0x9f   : > { %v586_v8 = vadd.f32 %v1176_v6, %v585_v7  ;;  %v1117_v6 = vld [vmem:[%s1569_s11 + $0x28] sm:$0xff] }
  0xa0   : > { %874 = vmatpush.bf16.msra.mxu0 %v1117_v6 }
  0xa1   : > { %v589_v9 = vmul.f32 0.35355338, %v586_v8 }
  0xa3   : > { %v590_v10 = vpack.c.bf16 %v589_v9, %v589_v9  ;;  %v1116_v9 = vld [vmem:[%s1569_s11 + $0x20] sm:$0xff] }
  0xa4   : > { %875 = vmatpush.bf16.msra.mxu0 %v1116_v9 }
  0xa5   : > { %1049 = vmatmul.msk.bf16.vlgmr.msrb.gmra.mxu1 %vm572_vm0, %v590_v10 }
  0xa6   : > { %v587_v11 = vpop.f32.mrf.mxu1 }
 0x122   : > { %v607_v12 = vpop.f32.mrf.mxu1 }
 0x123   : > { %v612_v13 = vsel %vm611_vm1, %v607_v12, -inf }
 0x124   : > { %613 = vmax.xlane.f32.xlu0 %v612_v13 }
 0x12a   : > { %v609_v14 = vpop.f32.mrf.mxu1 }
 0x197   : > { %v614_v15 = vpop.xlane.xlu0 %613 }
 0x198   : > { %v615_v16 = vsub.f32 %v607_v12, %v614_v15  ;;  %v1115_v12 = vld [vmem:[%s1569_s11 + $0x18] sm:$0xff] }
 0x199   : > { %876 = vmatpush.bf16.msra.mxu0 %v1115_v12  ;;  %v1182_v12 = vld [vmem:[%s1571_s13] ss:$0 sm:$0xff] }
 0x19a   : > { %v616_v17 = vmul.f32 1.442695, %v615_v16  ;;  %v1114_v16 = vld [vmem:[%s1569_s11 + $0x10] sm:$0xff] }
 0x19c   : > { %1184 = vpow2.f32 %v616_v17 }
 0x19d   : > { %877 = vmatpush.bf16.msra.mxu0 %v1114_v16 }
 0x1a1   : > { %878 = vmatpush.bf16.msra.mxu0 %v1113_v21 }
 0x1a2   : > { %v1185_v18 = vpop.eup %1184 }
 0x1a3   : > { %v618_v19 = vsel %vm611_vm1, %v1185_v18, 0.0 }
 0x1a4   : > { %619 = vadd.xlane.f32.xlu0 %v618_v19 }
 0x217   : > { %v620_v23 = vpop.xlane.xlu0 %619 }
 0x218   : > { %1186 = vrcp.f32 %v620_v23 }
 0x219   : > { %1188 = vrcp.f32 %v1276_v37 }
 0x21e   : > { %v1187_v24 = vpop.eup %1186 }
 0x21f   : > { %v622_v25 = vmul.f32 %v1187_v24, %v1185_v18  ;;  %v1189_v38 = vpop.eup %1188 }
 0x220   : > { %v689_v39 = vmul.f32 32.0, %v1189_v38  ;;  %vm693_vm3 = vweird.f32 %v1189_v38 }
 0x221   : > { %v623_v26 = vpack.c.bf16 %v622_v25, %v622_v25  ;;  %v1112_v25 = vld [vmem:[%s1569_s11] sm:$0xff] }
 0x222   : > { %v690_v40 = vsub.f32 1.0, %v689_v39  ;;  %879 = vmatpush.bf16.msra.mxu0 %v1112_v25 }
 0x223   : > { %1050 = vmatmul.msk.bf16.vlgmr.msra.gmra.mxu2 %vm611_vm1, %v623_v26 }
 0x224   : > { %v691_v41 = vmul.f32 %v1189_v38, %v690_v40 }
 0x226   : > { %v692_v42 = vadd.f32 %v1189_v38, %v691_v41 }
 0x228   : > { %v1457_v43 = vsel %vm693_vm3, %v1189_v38, %v692_v42 }
 0x2a6   : > { %v641_v28 = vpop.f32.mrf.mxu2 }
 0x2a7   : > { %v645_v29 = vpack.c.bf16 %v641_v28, %v641_v28 }
 0x2a9   : > { %1059 = vmatmul.msk.bf16.vlgmr.msra.gmra.mxu3 %vm572_vm0, %v645_v29 }
 0x2ae   : > { %v643_v30 = vpop.f32.mrf.mxu2 }
 0x32c   : > { %v678_v32 = vpop.f32.mrf.mxu3 }
 0x32d   : > { %v679_v33 = vadd.f32 %v1177_v31, %v678_v32 }
 0x32f   : > { %v682_v34 = vadd.f32 %v679_v33, %v550_v2 }
 0x331   : > { %v685_v35 = vsel %vm572_vm0, %v682_v34, 0.0 }
 0x332   : > { %686 = vadd.xlane.f32.xlu1 %v685_v35 }
 0x334   : > { %v680_v36 = vpop.f32.mrf.mxu3 }
 0x3a5   : > { %v687_v44 = vpop.xlane.xlu1 %686 }
 0x3a6   : > { %v695_v45 = vmul.f32 %v1457_v43, %v687_v44 }
 0x3a8   : > { %v696_v46 = vsub.f32 %v682_v34, %v695_v45 }
 0x3aa   : > { %v697_v47 = vmul.f32 %v696_v46, %v696_v46 }
 0x3ac   : > { %v698_v48 = vsel %vm572_vm0, %v697_v47, 0.0 }
 0x3ad   : > { %699 = vadd.xlane.f32.xlu1 %v698_v48 }
 0x420   : > { %v700_v51 = vpop.xlane.xlu1 %699 }
 0x421   : > { %v701_v52 = vmul.f32 %v700_v51, %v1457_v43 }
 0x423   : > { %v702_v53 = vadd.f32 1e-12, %v701_v52 }
 0x425   : > { %1190 = vrsqrt.f32 %v702_v53  ;;  %vm709_vm5 = vweird.f32 %v702_v53 }
 0x42b   : > { %v1191_v54 = vpop.eup %1190 }
 0x42c   : > { %v704_v55 = vmul.f32 %v1191_v54, %v702_v53  ;;  %vm710_vm4 = vweird.f32 %v1191_v54 }
 0x42d   : > { %vm711_vm6 = vmor %vm709_vm5, %vm710_vm4 }
 0x42e   : > { %v705_v56 = vmul.f32 %v1191_v54, %v704_v55 }
 0x430   : > { %v706_v57 = vmul.f32 0.5, %v705_v56  ;;  %v1181_v56 = vld [vmem:[%s1570_s12] ss:$0 sm:$0xff] }
 0x432   : > { %v707_v58 = vsub.f32 1.5, %v706_v57 }
 0x434   : > { %v708_v59 = vmul.f32 %v1191_v54, %v707_v58 }
 0x436   : > { %v712_v61 = vsel %vm711_vm6, %v1191_v54, %v708_v59 }
 0x437   : > { %v713_v62 = vmul.f32 %v712_v61, %v696_v46 }
 0x439   : > { %v717_v0 = vmul.f32 %v1178_v60, %v713_v62 }
 0x43b   : > { %v1474_v1 = vadd.f32 %v1179_v63, %v717_v0 }
 0x43d   : > { %v722_v2 = vpack.c.bf16 %v1474_v1, %v1474_v1 }
 0x43f   : > { %1068 = vmatmul.msk.bf16.vlgmr.msrb.gmra.mxu2 %vm572_vm0, %v722_v2 }
 0x4c2   : > { %v755_v7 = vpop.f32.mrf.mxu2 }
 0x4c3   : > { %v756_v8 = vadd.f32 %v1180_v5, %v755_v7 }
 0x4c5   : > { %v760_v10 = vmul.f32 0.70710677, %v756_v8  ;;  %v759_v52 = vmul.f32 0.5, %v756_v8 }
 0x4c7   : > { %v761_v11 = vmul.f32 %v760_v10, %v760_v10 }
 0x4c9   : > { %v762_v13 = vmin.f32 %v761_v11, 16.0 }
 0x4ca   : > { %v757_v14 = vpop.f32.mrf.mxu2 }
 0x4cb   : > { %v763_v15 = vmul.f32 2.1237322e-06, %v762_v13  ;;  %v774_v17 = vmul.f32 3.8918573e-05, %v762_v13  ;;  %v1183_v14 = vld [vmem:[%s1572_s14] ss:$0 sm:$0xff] }
 0x4cd   : > { %v764_v18 = vadd.f32 0.00028619796, %v763_v15  ;;  %v775_v19 = vadd.f32 0.001143296, %v774_v17 }
 0x4cf   : > { %v765_v20 = vmul.f32 %v764_v18, %v762_v13  ;;  %v776_v22 = vmul.f32 %v775_v19, %v762_v13 }
 0x4d1   : > { %v777_v23 = vadd.f32 0.014752088, %v776_v22  ;;  %v766_v24 = vadd.f32 0.0036580483, %v765_v20 }
 0x4d3   : > { %v778_v26 = vmul.f32 %v777_v23, %v762_v13  ;;  %v767_v28 = vmul.f32 %v766_v24, %v762_v13 }
 0x4d5   : > { %v779_v27 = vadd.f32 0.112945676, %v778_v26  ;;  %v768_v31 = vadd.f32 0.05243302, %v767_v28 }
 0x4d7   : > { %v780_v29 = vmul.f32 %v779_v27, %v762_v13  ;;  %v769_v34 = vmul.f32 %v768_v31, %v762_v13 }
 0x4d9   : > { %v781_v30 = vadd.f32 0.4994258, %v780_v29  ;;  %v770_v35 = vadd.f32 0.18741608, %v769_v34 }
 0x4db   : > { %v782_v32 = vmul.f32 %v781_v30, %v762_v13  ;;  %v771_v37 = vmul.f32 %v770_v35, %v762_v13 }
 0x4dd   : > { %v783_v33 = vadd.f32 1.0, %v782_v32  ;;  %v772_v41 = vadd.f32 1.1283791, %v771_v37 }
 0x4df   : > { %1192 = vrcp.f32 %v783_v33  ;;  %v795_v40 = vand.u32 2147483648, %v783_v33  ;;  %v793_v44 = vand.u32 2147483647, %v783_v33  ;;  %vm789_vm8 = vweird.f32 %v783_v33 }
 0x4e0   : > { %v773_v47 = vmul.f32 %v772_v41, %v760_v10 }
 0x4e1   : > { %v796_v46 = vor.u32 1.1754944e-38, %v795_v40  ;;  %vm794_vm10 = vcmp.eq.f32.partialorder %v793_v44, 8.507059e+37 }
 0x4e5   : > { %v1193_v36 = vpop.eup %1192 }
 0x4e6   : > { %v785_v38 = vmul.f32 %v1193_v36, %v783_v33  ;;  %vm790_vm7 = vweird.f32 %v1193_v36 }
 0x4e7   : > { %vm791_vm9 = vmor %vm789_vm8, %vm790_vm7 }
 0x4e8   : > { %v786_v39 = vsub.f32 1.0, %v785_v38 }
 0x4ea   : > { %v787_v42 = vmul.f32 %v1193_v36, %v786_v39 }
 0x4ec   : > { %v788_v45 = vadd.f32 %v1193_v36, %v787_v42 }
 0x4ee   : > { %v792_v48 = vsel %vm791_vm9, %v1193_v36, %v788_v45 }
 0x4ef   : > { %v797_v49 = vsel %vm794_vm10, %v796_v46, %v792_v48 }
 0x4f0   : > { %v798_v50 = vmul.f32 %v797_v49, %v773_v47 }
 0x4f2   : > { %v1069_v51 = vclamps-f32 %v798_v50, 1.0 }
 0x4f4   : > { %v801_v53 = vadd.f32 1.0, %v1069_v51 }
 0x4f6   : > { %v802_v54 = vmul.f32 %v801_v53, %v759_v52 }
 0x4f8   : > { %v803_v55 = vpack.c.bf16 %v802_v54, %v802_v54 }
 0x4fa   : > { %880 = vmatmul.bf16.vlgmr.msra.gmra.mxu0 %v803_v55 }
 0x577   : > { %v881_v57 = vpop.f32.mrf.mxu0 }
 0x578   : > { %v882_v58 = vadd.f32 %v1181_v56, %v881_v57 }
 0x57a   : > { %v885_v59 = vadd.f32 %v882_v58, %v1474_v1 }
 0x57c   : > { %v888_v60 = vsel %vm572_vm0, %v885_v59, 0.0 }
 0x57d   : > { %889 = vadd.xlane.f32.xlu2 %v888_v60 }
 0x57f   : > { %v883_v61 = vpop.f32.mrf.mxu0 }
 0x5f0   : > { %v890_v62 = vpop.xlane.xlu2 %889 }
 0x5f1   : > { %v891_v63 = vmul.f32 %v890_v62, %v1457_v43 }
 0x5f3   : > { %v892_v0 = vsub.f32 %v885_v59, %v891_v63 }
 0x5f5   : > { %v893_v2 = vmul.f32 %v892_v0, %v892_v0 }
 0x5f7   : > { %v894_v3 = vsel %vm572_vm0, %v893_v2, 0.0 }
 0x5f8   : > { %895 = vadd.xlane.f32.xlu2 %v894_v3 }
 0x66b   : > { %v896_v4 = vpop.xlane.xlu2 %895 }
 0x66c   : > { %v897_v5 = vmul.f32 %v896_v4, %v1457_v43 }
 0x66e   : > { %v898_v6 = vadd.f32 1e-12, %v897_v5 }
 0x670   : > { %1194 = vrsqrt.f32 %v898_v6  ;;  %vm905_vm12 = vweird.f32 %v898_v6 }
 0x676   : > { %v1195_v1 = vpop.eup %1194 }
 0x677   : > { %v900_v7 = vmul.f32 %v1195_v1, %v898_v6  ;;  %vm906_vm11 = vweird.f32 %v1195_v1 }
 0x678   : > { %vm907_vm13 = vmor %vm905_vm12, %vm906_vm11 }
 0x679   : > { %v901_v8 = vmul.f32 %v1195_v1, %v900_v7 }
 0x67b   : > { %v902_v9 = vmul.f32 0.5, %v901_v8 }
 0x67d   : > { %v903_v10 = vsub.f32 1.5, %v902_v9 }
 0x67f   : > { %v904_v11 = vmul.f32 %v1195_v1, %v903_v10 }
 0x681   : > { %v908_v43 = vsel %vm907_vm13, %v1195_v1, %v904_v11 }
 0x682   : > { %v909_v13 = vmul.f32 %v908_v43, %v892_v0 }
 0x684   : > { %v913_v15 = vmul.f32 %v1182_v12, %v909_v13 }
 0x686   : > { %v917_v16 = vadd.f32 %v1183_v14, %v913_v15 }
 0x688   : > { %918 = vst.msk [vmem:[%s533_s16] sm:$0xff] %vm572_vm0, %v917_v16 }
 0x689   : > { %1223 = shalt.err (!%p1220_p5)
}
 0x68a   : > { %1120 = dma.vmem_to_hbm [thread:$0]  (%p1397_p4), %s934_s21, 128, %s936_s0, %s920_s22  }
 0x68b PF: > { %s1589_s27 = sld [smem:[#allocation5_spill]]  ;;  %p1126_p6 = scmp.ge.s32.totalorder %s1274_s23, 2 }
 0x68d   : > { %p1123_p7 = pnand %p1126_p6, %p1404_p8 }
 0x68f   : > { %p1124_p9 = pneg %p1123_p7 }
 0x691   : > { %s947_s16 = sand.u32 1, %s1589_s27  }
 0x692   : > { %s948_s26 = scalar_lea.sflag [#allocation3], %s947_s16 }
 0x693   : > { %1249 = dma.done.wait (%p1124_p9), %s948_s26, 128  }
 0x694   : > { %1251 = vsyncadd (%p1124_p9), %s948_s26, 4294967168  ;;  %s28_s23 = sadd.s32 1, %s1274_s23   ;;  %s1591_s24 = sld [smem:[#allocation6_spill]] }
 0x695   : > { %p25_p10 = scmp.ge.s32.totalorder %s28_s23, 4   ;;  %s1592_s20 = sld [smem:[#allocation10_spill]] }
 0x696   : > { %s1593_s21 = sld [smem:[#allocation7_spill]]  ;;  %s1595_s18 = smov %s1258_s19 }
 0x697   : > { %s1594_s22 = sld [smem:[#allocation8_spill]]  ;;  %27 = sbr.rel (!%p25_p10) target bundleno = 6 (0x6), region = 121 }
 0x69a   : > { %s1596_s19 = smov %s1591_s24 }
 0x69c   :  { %954 = vsyncpa [#allocation3], 1 }
 0x69d   :  { %956 = vsyncpa [#allocation3 + $0x1], 1 }

// kernel: tpu_custom_call.1
= control target key start
LH: loop header
LB: loop body
LE: loop exit
PB: predicated region body
PF: predicated region fallthrough
CT: control target
= control target key end

     0   :  { %s1558_s0 = inlined_call_operand.vmem [shape: f32[2,8,32], index: 0, kind: input, shape index: {}]   ;;  %s1559_s1 = inlined_call_operand.vmem [shape: bf16[2,8,32], index: 1, kind: input, shape index: {}]   ;;  %s1560_s2 = inlined_call_operand.vmem [shape: bf16[2,8,32], index: 2, kind: input, shape index: {}]   ;;  %s1561_s3 = inlined_call_operand.vmem [shape: bf16[32,32], index: 3, kind: input, shape index: {}]   ;;  %s1562_s4 = inlined_call_operand.vmem [shape: f32[1,32], index: 4, kind: input, shape index: {}]   ;;  %s1563_s5 = inlined_call_operand.vmem [shape: bf16[32,32], index: 5, kind: input, shape index: {}]   ;;  %s1564_s6 = inlined_call_operand.vmem [shape: f32[1,32], index: 6, kind: input, shape index: {}]   ;;  %s1565_s7 = inlined_call_operand.vmem [shape: f32[1,32], index: 7, kind: input, shape index: {}]   ;;  %s1566_s8 = inlined_call_operand.vmem [shape: f32[1,32], index: 8, kind: input, shape index: {}]   ;;  %s1567_s9 = inlined_call_operand.vmem [shape: bf16[32,128], index: 9, kind: input, shape index: {}]   ;;  %s1568_s10 = inlined_call_operand.vmem [shape: f32[1,128], index: 10, kind: input, shape index: {}]   ;;  %s1569_s11 = inlined_call_operand.vmem [shape: bf16[128,32], index: 11, kind: input, shape index: {}]   ;;  %s1570_s12 = inlined_call_operand.vmem [shape: f32[1,32], index: 12, kind: input, shape index: {}]   ;;  %s1571_s13 = inlined_call_operand.vmem [shape: f32[1,32], index: 13, kind: input, shape index: {}]   ;;  %s1572_s14 = inlined_call_operand.vmem [shape: f32[1,32], index: 14, kind: input, shape index: {}]   ;;  %s1573_s15 = inlined_call_operand.hbm [shape: f32[2,8,32], index: 15, kind: output, shape index: {}]  }
   0x1   :  { %1579 = sst [smem:[#allocation11_spill]] %s1558_s0 }
   0x2   :  { %20 = vsyncpa [#allocation3], 0 }
   0x3   :  { %22 = vsyncpa [#allocation3 + $0x1], 0  ;;  %s1357_s18 = smov 0   ;;  %s1359_s19 = smov 0  }
   0x4   :  { %s1361_s20 = smov 0   ;;  %s1363_s21 = smov 0  }
   0x5   :  { %s1365_s22 = smov 0   ;;  %s1367_s23 = smov 0  }
   0x6 LB: > { %1580 = sst [smem:[#allocation5_spill]] %s1254_s18  ;;  %s1031_s24 = sadd.s32 4294967295, %s1274_s23   ;;  %s1274_s23 = sphi %s1367_s23, %s28_s23   ;;  %s1270_s22 = sphi %s1365_s22, %s1594_s22   ;;  %s1266_s21 = sphi %s1363_s21, %s1593_s21   ;;  %s1262_s20 = sphi %s1361_s20, %s1592_s20   ;;  %s1258_s19 = sphi %s1359_s19, %s1596_s19   ;;  %s1254_s18 = sphi %s1357_s18, %s1595_s18  }
   0x7   : > { %1581 = sst [smem:[#allocation6_spill]] %s1262_s20  ;;  %s1032_s25 = sadd.s32 4294967294, %s1274_s23  }
   0x8   : > { %1582 = sst [smem:[#allocation7_spill]] %s1270_s22  ;;  %s40_s26 = sadd.s32 1, %s1270_s22 }
   0x9   : > { %s381_s27 = sadd.s32 1, %s1262_s20  ;;  %p42_p0 = scmp.ge.s32.totalorder %s40_s26, 2 }
   0xa   : > { %p391_p1 = scmp.ne.s32.totalorder %s1262_s20, %s1258_s19  ;;  %p392_p2 = scmp.eq.s32.totalorder %s1031_s24, 1 }
   0xb   : > { %p397_p3 = scmp.ne.s32.totalorder %s1258_s19, %s1254_s18  ;;  %s1598_s26 = smov (%p42_p0, %s40_s26), 0 }
   0xc   : > { %1583 = sst [smem:[#allocation8_spill]] %s1598_s26  ;;  %p1397_p4 = por %p392_p2, %p391_p1 }
   0xd   : > { %p398_p5 = scmp.eq.s32.totalorder %s1032_s25, 1  ;;  %s376_s29 = ssub.s32 %s1270_s22, %s1598_s26 }
   0xe   : > { %p1035_p6 = scmp.ge.s32.totalorder %s1274_s23, 1  ;;  %p379_p7 = scmp.eq.s32.totalorder %s376_s29, 0 }
   0xf   : > { %p1404_p8 = por %p398_p5, %p397_p3  ;;  %p476_p9 = scmp.lt.s32.totalorder %s1274_s23, 3 }
  0x10   : > { %s1410_s16 = scalar_select %p379_p7, %s1262_s20, %s381_s27  }
  0x11   : > { %s1585_s30 = scalar_select %p1404_p8, 1, 0 }
  0x12   : > { %1587 = sst [smem:[#allocation10_spill]] %s1410_s16  ;;  %p477_p10 = pnand %p1035_p6, %p476_p9 }
  0x13   : > { %1586 = sst [smem:[#allocation9_spill]] %s1585_s30  ;;  %p534_p11 = scmp.lt.s32.totalorder (!%p477_p10), %s1266_s21, 1 }
  0x14   : > { %480 = sbr.rel (%p477_p10) target bundleno = 1675 (0x68b), region = 80  ;;  %s1588_s0 = sld [smem:[#allocation11_spill]] (!%p477_p10) }
  0x19   : > { %v1107_v0 = vld [vmem:[%s1561_s3 + $0x8] sm:$0xff]  ;;  %v1106_v1 = vld [vmem:[%s1561_s3] sm:$0xff]  ;;  %s1420_s29 = scalar_select %p534_p11, %s1266_s21, 1  ;;  %vm572_vm0 = vcmask 261120   ;;  %vm611_vm1 = vcmask 64512   ;;  %vm628_vm2 = vcmask 1043456  }
  0x1a   : > { %582 = vmatpush.bf16.msra.mxu1 %v1107_v0  ;;  %v1176_v6 = vld [vmem:[%s1562_s4] ss:$0 sm:$0xff]  ;;  %v1109_v22 = vld [vmem:[%s1563_s5 + $0x8] sm:$0xff]  ;;  %v1276_v37 = vmov 32.0  }
  0x1b   : > { %s1037_s27 = sshll.u32 %s1420_s29, 3  ;;  %s1038_s22 = sshll.u32 %s1420_s29, 2  ;;  %675 = vmatpush.bf16.msra.mxu3 %v1109_v22  ;;  %v1108_v27 = vld [vmem:[%s1563_s5] sm:$0xff]  ;;  %v1111_v49 = vld [vmem:[%s1567_s9 + $0x8] sm:$0xff] }
  0x1c   : > { %s540_s17 = scalar_lea.vmem %s1588_s0, %s1037_s27  ;;  %s544_s18 = scalar_lea.vmem %s1559_s1, %s1038_s22  ;;  %v1177_v31 = vld [vmem:[%s1564_s6] ss:$0 sm:$0xff] }
  0x1d   : > { %v550_v2 = vld [vmem:[%s540_s17] sm:$0xff]  ;;  %s548_s30 = scalar_lea.vmem %s1560_s2, %s1038_s22  ;;  %s531_s27 = sand.u32 1, %s1258_s19  }
  0x1e   : > { %583 = vmatpush.bf16.msra.mxu1 %v1106_v1  ;;  %v591_v3 = vld [vmem:[%s544_s18] sm:$0xf]  ;;  %v551_v4 = vpack.c.bf16 %v550_v2, %v550_v2  ;;  %s1036_s29 = sshll.u32 %s531_s27, 3  ;;  %s1103_s17 = sshll.u32 %s1266_s21, 3 }
  0x1f   : > { %v596_v5 = vsel %vm572_vm0, %v591_v3, 0  ;;  %v624_v20 = vld [vmem:[%s548_s30] sm:$0xf]  ;;  %676 = vmatpush.bf16.msra.mxu3 %v1108_v27  ;;  %v1119_v3 = vld [vmem:[%s1569_s11 + $0x38] sm:$0xff]  ;;  %s931_s18 = scalar_lea.hbm %s1573_s15, %s1103_s17  ;;  %s533_s16 = scalar_lea.vmem [#allocation2], %s1036_s29 }
  0x20   : > { %v630_v21 = vsel %vm628_vm2, %v624_v20, 0  ;;  %v1110_v50 = vld [vmem:[%s1567_s9] sm:$0xff]  ;;  %872 = vmatpush.bf16.msra.mxu0 %v1119_v3  ;;  %s933_s21 = sshll.u32 %s533_s16, 4  ;;  %s935_s0 = sshll.u32 %s931_s18, 4  ;;  %s934_s21 = int_to_ptr.vmem [resolvable:$true] %s933_s21  ;;  %s936_s0 = int_to_ptr.hbm [resolvable:$true] %s935_s0 }
  0x21   : > { %1048 = vmatmul.msk.bf16.vlgmr.msra.gmra.mxu1 %vm572_vm0, %v551_v4  ;;  %639 = vmatpush.bf16.msra.mxu2 %v630_v21  ;;  %v1178_v60 = vld [vmem:[%s1565_s7] ss:$0 sm:$0xff]  ;;  %v1118_v4 = vld [vmem:[%s1569_s11 + $0x30] sm:$0xff]  ;;  %v1113_v21 = vld [vmem:[%s1569_s11 + $0x8] sm:$0xff]  ;;  %s920_s22 = scalar_lea.sflag [#allocation3], %s531_s27  ;;  %s1210_s24 = sshra.s32 %s936_s0, 4  ;;  %s1211_s24 = int_to_ptr.hbm [resolvable:$true] %s1210_s24 }
  0x22   : > { %605 = vmatpush.bf16.xpose.msrb.mxu1 %v596_v5  ;;  %v1179_v63 = vld [vmem:[%s1566_s8] ss:$0 sm:$0xff]  ;;  %s1212_s17 = scalar_lea.hbm %s1211_s24, 8  ;;  %s1216_s29 = scalar_lea.hbm %s1573_s15, 16 }
  0x23   : > { %v1180_v5 = vld [vmem:[%s1568_s10] ss:$0 sm:$0xff]  ;;  %p1213_p12 = scmp.ne.s32.totalorder %s1211_s24, %s1212_s17  ;;  %p1217_p1 = scmp.lt.s32.totalorder %s1211_s24, %s1573_s15 }
  0x24   : > { %873 = vmatpush.bf16.msra.mxu0 %v1118_v4  ;;  %p1218_p2 = scmp.lt.s32.totalorder %s1216_s29, %s1212_s17 }
  0x25   : > { %752 = vmatpush.bf16.msrb.mxu2 %v1111_v49  ;;  %p1214_p13 = pnand %p1213_p12, %p1397_p4 }
  0x26   : > { %p1219_p3 = por %p1218_p2, %p1217_p1 }
  0x27   : > { %p1215_p0 = pneg %p1214_p13 }
  0x29   : > { %753 = vmatpush.bf16.msrb.mxu2 %v1110_v50  ;;  %p1220_p5 = pnand %p1219_p3, %p1215_p0 }
  0x9e   : > { %v585_v7 = vpop.f32.mrf.mxu1 }
  0x9f   : > { %v586_v8 = vadd.f32 %v1176_v6, %v585_v7  ;;  %v1117_v6 = vld [vmem:[%s1569_s11 + $0x28] sm:$0xff] }
  0xa0   : > { %874 = vmatpush.bf16.msra.mxu0 %v1117_v6 }
  0xa1   : > { %v589_v9 = vmul.f32 0.35355338, %v586_v8 }
  0xa3   : > { %v590_v10 = vpack.c.bf16 %v589_v9, %v589_v9  ;;  %v1116_v9 = vld [vmem:[%s1569_s11 + $0x20] sm:$0xff] }
  0xa4   : > { %875 = vmatpush.bf16.msra.mxu0 %v1116_v9 }
  0xa5   : > { %1049 = vmatmul.msk.bf16.vlgmr.msrb.gmra.mxu1 %vm572_vm0, %v590_v10 }
  0xa6   : > { %v587_v11 = vpop.f32.mrf.mxu1 }
 0x122   : > { %v607_v12 = vpop.f32.mrf.mxu1 }
 0x123   : > { %v612_v13 = vsel %vm611_vm1, %v607_v12, -inf }
 0x124   : > { %613 = vmax.xlane.f32.xlu0 %v612_v13 }
 0x12a   : > { %v609_v14 = vpop.f32.mrf.mxu1 }
 0x197   : > { %v614_v15 = vpop.xlane.xlu0 %613 }
 0x198   : > { %v615_v16 = vsub.f32 %v607_v12, %v614_v15  ;;  %v1115_v12 = vld [vmem:[%s1569_s11 + $0x18] sm:$0xff] }
 0x199   : > { %876 = vmatpush.bf16.msra.mxu0 %v1115_v12  ;;  %v1182_v12 = vld [vmem:[%s1571_s13] ss:$0 sm:$0xff] }
 0x19a   : > { %v616_v17 = vmul.f32 1.442695, %v615_v16  ;;  %v1114_v16 = vld [vmem:[%s1569_s11 + $0x10] sm:$0xff] }
 0x19c   : > { %1184 = vpow2.f32 %v616_v17 }
 0x19d   : > { %877 = vmatpush.bf16.msra.mxu0 %v1114_v16 }
 0x1a1   : > { %878 = vmatpush.bf16.msra.mxu0 %v1113_v21 }
 0x1a2   : > { %v1185_v18 = vpop.eup %1184 }
 0x1a3   : > { %v618_v19 = vsel %vm611_vm1, %v1185_v18, 0.0 }
 0x1a4   : > { %619 = vadd.xlane.f32.xlu0 %v618_v19 }
 0x217   : > { %v620_v23 = vpop.xlane.xlu0 %619 }
 0x218   : > { %1186 = vrcp.f32 %v620_v23 }
 0x219   : > { %1188 = vrcp.f32 %v1276_v37 }
 0x21e   : > { %v1187_v24 = vpop.eup %1186 }
 0x21f   : > { %v622_v25 = vmul.f32 %v1187_v24, %v1185_v18  ;;  %v1189_v38 = vpop.eup %1188 }
 0x220   : > { %v689_v39 = vmul.f32 32.0, %v1189_v38  ;;  %vm693_vm3 = vweird.f32 %v1189_v38 }
 0x221   : > { %v623_v26 = vpack.c.bf16 %v622_v25, %v622_v25  ;;  %v1112_v25 = vld [vmem:[%s1569_s11] sm:$0xff] }
 0x222   : > { %v690_v40 = vsub.f32 1.0, %v689_v39  ;;  %879 = vmatpush.bf16.msra.mxu0 %v1112_v25 }
 0x223   : > { %1050 = vmatmul.msk.bf16.vlgmr.msra.gmra.mxu2 %vm611_vm1, %v623_v26 }
 0x224   : > { %v691_v41 = vmul.f32 %v1189_v38, %v690_v40 }
 0x226   : > { %v692_v42 = vadd.f32 %v1189_v38, %v691_v41 }
 0x228   : > { %v1457_v43 = vsel %vm693_vm3, %v1189_v38, %v692_v42 }
 0x2a6   : > { %v641_v28 = vpop.f32.mrf.mxu2 }
 0x2a7   : > { %v645_v29 = vpack.c.bf16 %v641_v28, %v641_v28 }
 0x2a9   : > { %1059 = vmatmul.msk.bf16.vlgmr.msra.gmra.mxu3 %vm572_vm0, %v645_v29 }
 0x2ae   : > { %v643_v30 = vpop.f32.mrf.mxu2 }
 0x32c   : > { %v678_v32 = vpop.f32.mrf.mxu3 }
 0x32d   : > { %v679_v33 = vadd.f32 %v1177_v31, %v678_v32 }
 0x32f   : > { %v682_v34 = vadd.f32 %v679_v33, %v550_v2 }
 0x331   : > { %v685_v35 = vsel %vm572_vm0, %v682_v34, 0.0 }
 0x332   : > { %686 = vadd.xlane.f32.xlu1 %v685_v35 }
 0x334   : > { %v680_v36 = vpop.f32.mrf.mxu3 }
 0x3a5   : > { %v687_v44 = vpop.xlane.xlu1 %686 }
 0x3a6   : > { %v695_v45 = vmul.f32 %v1457_v43, %v687_v44 }
 0x3a8   : > { %v696_v46 = vsub.f32 %v682_v34, %v695_v45 }
 0x3aa   : > { %v697_v47 = vmul.f32 %v696_v46, %v696_v46 }
 0x3ac   : > { %v698_v48 = vsel %vm572_vm0, %v697_v47, 0.0 }
 0x3ad   : > { %699 = vadd.xlane.f32.xlu1 %v698_v48 }
 0x420   : > { %v700_v51 = vpop.xlane.xlu1 %699 }
 0x421   : > { %v701_v52 = vmul.f32 %v700_v51, %v1457_v43 }
 0x423   : > { %v702_v53 = vadd.f32 1e-12, %v701_v52 }
 0x425   : > { %1190 = vrsqrt.f32 %v702_v53  ;;  %vm709_vm5 = vweird.f32 %v702_v53 }
 0x42b   : > { %v1191_v54 = vpop.eup %1190 }
 0x42c   : > { %v704_v55 = vmul.f32 %v1191_v54, %v702_v53  ;;  %vm710_vm4 = vweird.f32 %v1191_v54 }
 0x42d   : > { %vm711_vm6 = vmor %vm709_vm5, %vm710_vm4 }
 0x42e   : > { %v705_v56 = vmul.f32 %v1191_v54, %v704_v55 }
 0x430   : > { %v706_v57 = vmul.f32 0.5, %v705_v56  ;;  %v1181_v56 = vld [vmem:[%s1570_s12] ss:$0 sm:$0xff] }
 0x432   : > { %v707_v58 = vsub.f32 1.5, %v706_v57 }
 0x434   : > { %v708_v59 = vmul.f32 %v1191_v54, %v707_v58 }
 0x436   : > { %v712_v61 = vsel %vm711_vm6, %v1191_v54, %v708_v59 }
 0x437   : > { %v713_v62 = vmul.f32 %v712_v61, %v696_v46 }
 0x439   : > { %v717_v0 = vmul.f32 %v1178_v60, %v713_v62 }
 0x43b   : > { %v1474_v1 = vadd.f32 %v1179_v63, %v717_v0 }
 0x43d   : > { %v722_v2 = vpack.c.bf16 %v1474_v1, %v1474_v1 }
 0x43f   : > { %1068 = vmatmul.msk.bf16.vlgmr.msrb.gmra.mxu2 %vm572_vm0, %v722_v2 }
 0x4c2   : > { %v755_v7 = vpop.f32.mrf.mxu2 }
 0x4c3   : > { %v756_v8 = vadd.f32 %v1180_v5, %v755_v7 }
 0x4c5   : > { %v760_v10 = vmul.f32 0.70710677, %v756_v8  ;;  %v759_v52 = vmul.f32 0.5, %v756_v8 }
 0x4c7   : > { %v761_v11 = vmul.f32 %v760_v10, %v760_v10 }
 0x4c9   : > { %v762_v13 = vmin.f32 %v761_v11, 16.0 }
 0x4ca   : > { %v757_v14 = vpop.f32.mrf.mxu2 }
 0x4cb   : > { %v763_v15 = vmul.f32 2.1237322e-06, %v762_v13  ;;  %v774_v17 = vmul.f32 3.8918573e-05, %v762_v13  ;;  %v1183_v14 = vld [vmem:[%s1572_s14] ss:$0 sm:$0xff] }
 0x4cd   : > { %v764_v18 = vadd.f32 0.00028619796, %v763_v15  ;;  %v775_v19 = vadd.f32 0.001143296, %v774_v17 }
 0x4cf   : > { %v765_v20 = vmul.f32 %v764_v18, %v762_v13  ;;  %v776_v22 = vmul.f32 %v775_v19, %v762_v13 }
 0x4d1   : > { %v777_v23 = vadd.f32 0.014752088, %v776_v22  ;;  %v766_v24 = vadd.f32 0.0036580483, %v765_v20 }
 0x4d3   : > { %v778_v26 = vmul.f32 %v777_v23, %v762_v13  ;;  %v767_v28 = vmul.f32 %v766_v24, %v762_v13 }
 0x4d5   : > { %v779_v27 = vadd.f32 0.112945676, %v778_v26  ;;  %v768_v31 = vadd.f32 0.05243302, %v767_v28 }
 0x4d7   : > { %v780_v29 = vmul.f32 %v779_v27, %v762_v13  ;;  %v769_v34 = vmul.f32 %v768_v31, %v762_v13 }
 0x4d9   : > { %v781_v30 = vadd.f32 0.4994258, %v780_v29  ;;  %v770_v35 = vadd.f32 0.18741608, %v769_v34 }
 0x4db   : > { %v782_v32 = vmul.f32 %v781_v30, %v762_v13  ;;  %v771_v37 = vmul.f32 %v770_v35, %v762_v13 }
 0x4dd   : > { %v783_v33 = vadd.f32 1.0, %v782_v32  ;;  %v772_v41 = vadd.f32 1.1283791, %v771_v37 }
 0x4df   : > { %1192 = vrcp.f32 %v783_v33  ;;  %v795_v40 = vand.u32 2147483648, %v783_v33  ;;  %v793_v44 = vand.u32 2147483647, %v783_v33  ;;  %vm789_vm8 = vweird.f32 %v783_v33 }
 0x4e0   : > { %v773_v47 = vmul.f32 %v772_v41, %v760_v10 }
 0x4e1   : > { %v796_v46 = vor.u32 1.1754944e-38, %v795_v40  ;;  %vm794_vm10 = vcmp.eq.f32.partialorder %v793_v44, 8.507059e+37 }
 0x4e5   : > { %v1193_v36 = vpop.eup %1192 }
 0x4e6   : > { %v785_v38 = vmul.f32 %v1193_v36, %v783_v33  ;;  %vm790_vm7 = vweird.f32 %v1193_v36 }
 0x4e7   : > { %vm791_vm9 = vmor %vm789_vm8, %vm790_vm7 }
 0x4e8   : > { %v786_v39 = vsub.f32 1.0, %v785_v38 }
 0x4ea   : > { %v787_v42 = vmul.f32 %v1193_v36, %v786_v39 }
 0x4ec   : > { %v788_v45 = vadd.f32 %v1193_v36, %v787_v42 }
 0x4ee   : > { %v792_v48 = vsel %vm791_vm9, %v1193_v36, %v788_v45 }
 0x4ef   : > { %v797_v49 = vsel %vm794_vm10, %v796_v46, %v792_v48 }
 0x4f0   : > { %v798_v50 = vmul.f32 %v797_v49, %v773_v47 }
 0x4f2   : > { %v1069_v51 = vclamps-f32 %v798_v50, 1.0 }
 0x4f4   : > { %v801_v53 = vadd.f32 1.0, %v1069_v51 }
 0x4f6   : > { %v802_v54 = vmul.f32 %v801_v53, %v759_v52 }
 0x4f8   : > { %v803_v55 = vpack.c.bf16 %v802_v54, %v802_v54 }
 0x4fa   : > { %880 = vmatmul.bf16.vlgmr.msra.gmra.mxu0 %v803_v55 }
 0x577   : > { %v881_v57 = vpop.f32.mrf.mxu0 }
 0x578   : > { %v882_v58 = vadd.f32 %v1181_v56, %v881_v57 }
 0x57a   : > { %v885_v59 = vadd.f32 %v882_v58, %v1474_v1 }
 0x57c   : > { %v888_v60 = vsel %vm572_vm0, %v885_v59, 0.0 }
 0x57d   : > { %889 = vadd.xlane.f32.xlu2 %v888_v60 }
 0x57f   : > { %v883_v61 = vpop.f32.mrf.mxu0 }
 0x5f0   : > { %v890_v62 = vpop.xlane.xlu2 %889 }
 0x5f1   : > { %v891_v63 = vmul.f32 %v890_v62, %v1457_v43 }
 0x5f3   : > { %v892_v0 = vsub.f32 %v885_v59, %v891_v63 }
 0x5f5   : > { %v893_v2 = vmul.f32 %v892_v0, %v892_v0 }
 0x5f7   : > { %v894_v3 = vsel %vm572_vm0, %v893_v2, 0.0 }
 0x5f8   : > { %895 = vadd.xlane.f32.xlu2 %v894_v3 }
 0x66b   : > { %v896_v4 = vpop.xlane.xlu2 %895 }
 0x66c   : > { %v897_v5 = vmul.f32 %v896_v4, %v1457_v43 }
 0x66e   : > { %v898_v6 = vadd.f32 1e-12, %v897_v5 }
 0x670   : > { %1194 = vrsqrt.f32 %v898_v6  ;;  %vm905_vm12 = vweird.f32 %v898_v6 }
 0x676   : > { %v1195_v1 = vpop.eup %1194 }
 0x677   : > { %v900_v7 = vmul.f32 %v1195_v1, %v898_v6  ;;  %vm906_vm11 = vweird.f32 %v1195_v1 }
 0x678   : > { %vm907_vm13 = vmor %vm905_vm12, %vm906_vm11 }
 0x679   : > { %v901_v8 = vmul.f32 %v1195_v1, %v900_v7 }
 0x67b   : > { %v902_v9 = vmul.f32 0.5, %v901_v8 }
 0x67d   : > { %v903_v10 = vsub.f32 1.5, %v902_v9 }
 0x67f   : > { %v904_v11 = vmul.f32 %v1195_v1, %v903_v10 }
 0x681   : > { %v908_v43 = vsel %vm907_vm13, %v1195_v1, %v904_v11 }
 0x682   : > { %v909_v13 = vmul.f32 %v908_v43, %v892_v0 }
 0x684   : > { %v913_v15 = vmul.f32 %v1182_v12, %v909_v13 }
 0x686   : > { %v917_v16 = vadd.f32 %v1183_v14, %v913_v15 }
 0x688   : > { %918 = vst.msk [vmem:[%s533_s16] sm:$0xff] %vm572_vm0, %v917_v16 }
 0x689   : > { %1223 = shalt.err (!%p1220_p5)
}
 0x68a   : > { %1120 = dma.vmem_to_hbm [thread:$0]  (%p1397_p4), %s934_s21, 128, %s936_s0, %s920_s22  }
 0x68b PF: > { %s1589_s27 = sld [smem:[#allocation5_spill]]  ;;  %p1126_p6 = scmp.ge.s32.totalorder %s1274_s23, 2 }
 0x68d   : > { %p1123_p7 = pnand %p1126_p6, %p1404_p8 }
 0x68f   : > { %p1124_p9 = pneg %p1123_p7 }
 0x691   : > { %s947_s16 = sand.u32 1, %s1589_s27  }
 0x692   : > { %s948_s26 = scalar_lea.sflag [#allocation3], %s947_s16 }
 0x693   : > { %1249 = dma.done.wait (%p1124_p9), %s948_s26, 128  }
 0x694   : > { %1251 = vsyncadd (%p1124_p9), %s948_s26, 4294967168  ;;  %s28_s23 = sadd.s32 1, %s1274_s23   ;;  %s1591_s24 = sld [smem:[#allocation6_spill]] }
 0x695   : > { %p25_p10 = scmp.ge.s32.totalorder %s28_s23, 4   ;;  %s1592_s20 = sld [smem:[#allocation10_spill]] }
 0x696   : > { %s1593_s21 = sld [smem:[#allocation7_spill]]  ;;  %s1595_s18 = smov %s1258_s19 }
 0x697   : > { %s1594_s22 = sld [smem:[#allocation8_spill]]  ;;  %27 = sbr.rel (!%p25_p10) target bundleno = 6 (0x6), region = 121 }
 0x69a   : > { %s1596_s19 = smov %s1591_s24 }
 0x69c   :  { %954 = vsyncpa [#allocation3], 1 }
 0x69d   :  { %956 = vsyncpa [#allocation3 + $0x1], 1 }

</bundles_post_ra>
